<compile_context>
chip_gen: v7x
topology: tpu7x:2x2x1
jax: 0.10.0
libtpu: 0.0.40
codegen_flags: <defaults>
</compile_context>

<pallas_src>
import math

import numpy as np

import jax
import jax.numpy as jnp
from jax.experimental import pallas as pl
from jax.experimental.pallas import tpu as pltpu

# ----------------------------- config ---------------------------------------
VOCAB_SIZE = 50
D_MODEL = 32
NUM_HEADS = 4
HEAD_DIM = D_MODEL // NUM_HEADS
FF_DIM = 64
NUM_ENCODER_LAYERS = 2
NUM_CLASSES = 4
SEQ_LEN = 8
BATCH = 2
EPS = 1e-5  # PyTorch nn.LayerNorm default

N_TOKENS = BATCH * SEQ_LEN        # 16 flattened (b, s) rows
N_GROUPS = NUM_HEADS * BATCH      # 8  head-major (h, b) attention groups
SLAB_WIDTH = 128                  # lane width of the packed weight slab


# --------------------------- helpers ----------------------------------------
def _layernorm(x, g, b):
    mu = jnp.mean(x, axis=-1, keepdims=True)
    var = jnp.mean((x - mu) ** 2, axis=-1, keepdims=True)
    return (x - mu) * jax.lax.rsqrt(var + EPS) * g + b


# --------------------------- fused Pallas kernel -----------------------------
def make_kernel(entries):
    """entries: name -> (row0, nrows, ncols) static layout of the weight slab."""

    def kernel(tok_ref, slab_ref, o_ref):
        def get(name):
            r0, nr, nc = entries[name]
            return slab_ref[r0:r0 + nr, 0:nc]

        # --- TokenEmbedding (one-hot MXU gather; sqrt(d) pre-folded) + PE ----
        tok = tok_ref[...]                                              # (N,1) i32
        vocab_ids = jax.lax.broadcasted_iota(jnp.int32, (N_TOKENS, VOCAB_SIZE), 1)
        onehot = (vocab_ids == tok).astype(jnp.float32)                 # (N, V)
        x = jnp.dot(onehot, get("table"),
                    preferred_element_type=jnp.float32) + get("pe")     # (N, D)

        mask_in = get("mask_in")     # (H*N, H*D) head-block-diag input mask
        mask_out = get("mask_out")   # (H*N, D)   head-block-diag output mask
        collapse = get("collapse")   # (N, H*N)   sums per-head contributions

        # --- Encoder stack (static unroll) ------------------------------------
        for li in range(NUM_ENCODER_LAYERS):
            def L(s, _li=li):
                return f"L{_li}_{s}"

            wqkv_g, bqkv_g = get(L("wqkv_g")), get(L("bqkv_g"))
            wo, bo = get(L("wo")), get(L("bo"))
            g1, b1n = get(L("ln1_g")), get(L("ln1_b"))
            w1, b1 = get(L("w1")), get(L("b1"))
            w2, b2 = get(L("w2")), get(L("b2"))
            g2, b2n = get(L("ln2_g")), get(L("ln2_b"))

            # ---- multi-head attention, head-major rows (h, b, s) -------------
            # Replicate x across heads along sublanes, widen across lanes and
            # mask so each row group sees only its own head's weight block,
            # then ONE matmul produces per-head q|k|v (scale folded host-side).
            x_rep = jnp.concatenate([x] * NUM_HEADS, axis=0)            # (H*N, D)
            x_big = jnp.concatenate([x_rep] * NUM_HEADS, axis=1) * mask_in
            qkv = jnp.dot(x_big, wqkv_g,
                          preferred_element_type=jnp.float32) + bqkv_g  # (H*N, 3*Hd)
            q = qkv[:, 0:HEAD_DIM].reshape(N_GROUPS, SEQ_LEN, HEAD_DIM)
            k = qkv[:, HEAD_DIM:2 * HEAD_DIM].reshape(N_GROUPS, SEQ_LEN, HEAD_DIM)
            v = qkv[:, 2 * HEAD_DIM:3 * HEAD_DIM].reshape(N_GROUPS, SEQ_LEN, HEAD_DIM)

            # one batched score/context einsum and ONE softmax issue per layer
            s = jnp.einsum('gqd,gkd->gqk', q, k,
                           preferred_element_type=jnp.float32)          # (G,S,S)
            s = s - jnp.max(s, axis=-1, keepdims=True)
            p = jnp.exp(s)
            p = p * pl.reciprocal(jnp.sum(p, axis=-1, keepdims=True), approx=True)
            ctx = jnp.einsum('gqk,gkd->gqd', p, v,
                             preferred_element_type=jnp.float32)        # (G,S,Hd)

            # per-head Wo row-block projection + constant collapse-sum over
            # heads == concat(head_outputs) @ Wo, without any lane concat of
            # head pieces or accumulator adds.
            ctx_flat = ctx.reshape(NUM_HEADS * N_TOKENS, HEAD_DIM)      # (H*N, Hd)
            ctx_wide = jnp.concatenate([ctx_flat] * NUM_HEADS, axis=1) * mask_out
            contrib = jnp.dot(ctx_wide, wo,
                              preferred_element_type=jnp.float32)       # (H*N, D)
            attn = jnp.dot(collapse, contrib,
                           preferred_element_type=jnp.float32) + bo     # (N, D)

            # ---- post-LN residual blocks --------------------------------------
            x = _layernorm(x + attn, g1, b1n)
            h1 = jnp.maximum(
                jnp.dot(x, w1, preferred_element_type=jnp.float32) + b1, 0.0)
            ff = jnp.dot(h1, w2, preferred_element_type=jnp.float32) + b2
            x = _layernorm(x + ff, g2, b2n)

        # --- ClassifierHead: constant mean-pool matmul + linear ----------------
        pooled = jnp.dot(get("pool"), x, preferred_element_type=jnp.float32)
        o_ref[...] = (jnp.dot(pooled, get("cls_w"),
                              preferred_element_type=jnp.float32) + get("cls_b"))

    return kernel


def make_forward(entries):
    kernel = make_kernel(entries)

    def forward(tokens, slab):
        tok2d = tokens.reshape(N_TOKENS, 1).astype(jnp.int32)
        return pl.pallas_call(
            kernel,
            out_shape=jax.ShapeDtypeStruct((BATCH, NUM_CLASSES), jnp.float32),
            # everything (slab ~0.5 MiB + tiny activations) easily fits; keep a
            # small scoped-VMEM budget (friendly to v7x's 64 MiB VMEM).
            compiler_params=pltpu.CompilerParams(
                vmem_limit_bytes=4 * 1024 * 1024),
        )(tok2d, slab)

    return forward


# ------------------------ one-time host-side packing -------------------------
def _prep_layer_np(layer):
    """Canonical per-layer tuple -> head-major block weights for the kernel."""
    arrs = [np.asarray(a, np.float32) for a in layer]
    (wq, bq, wk, bk, wv, bv, wo, bo, g1, b1n, w1, b1, w2, b2, g2, b2n) = arrs
    scale = 1.0 / math.sqrt(HEAD_DIM)
    wq = wq * scale
    bq = bq * scale
    w_blocks, b_blocks = [], []
    for h in range(NUM_HEADS):
        sl = slice(h * HEAD_DIM, (h + 1) * HEAD_DIM)
        # rows h*D..h*D+D-1 hold [Wq_h | Wk_h | Wv_h]  -> (H*D, 3*Hd)
        w_blocks.append(np.concatenate([wq[:, sl], wk[:, sl], wv[:, sl]], axis=1))
        hb = np.concatenate([bq[0, sl], bk[0, sl], bv[0, sl]])[None, :]   # (1, 3*Hd)
        b_blocks.append(np.tile(hb, (N_TOKENS, 1)))                       # (N, 3*Hd)
    wqkv_g = np.concatenate(w_blocks, axis=0)                             # (H*D, 3*Hd)
    bqkv_g = np.concatenate(b_blocks, axis=0)                             # (H*N, 3*Hd)
    return wqkv_g, bqkv_g, wo, bo, g1, b1n, w1, b1, w2, b2, g2, b2n


def pack_params(params):
    """Pack everything the kernel needs into ONE (rows, 128) f32 slab."""
    entries = {}
    blocks = []
    cursor = 0

    def add(name, arr):
        nonlocal cursor
        a = np.asarray(arr, dtype=np.float32)
        if a.ndim == 1:
            a = a[None, :]
        r, c = a.shape
        assert c <= SLAB_WIDTH, name
        pr = -(-r // 8) * 8                       # 8-row (sublane) aligned blocks
        blk = np.zeros((pr, SLAB_WIDTH), np.float32)
        blk[:r, :c] = a
        entries[name] = (cursor, r, c)
        blocks.append(blk)
        cursor += pr

    # embedding table with sqrt(d_model) folded in, batch-tiled sinusoidal PE
    add("table", np.asarray(params["embedding"], np.float32) * math.sqrt(D_MODEL))
    add("pe", np.tile(np.asarray(params["pe"], np.float32), (BATCH, 1)))

    # constant head-block-diagonal masks, head collapse and mean-pool matrices
    r = np.arange(NUM_HEADS * N_TOKENS)
    add("mask_in", (r[:, None] // N_TOKENS ==
                    np.arange(NUM_HEADS * D_MODEL)[None, :] // D_MODEL
                    ).astype(np.float32))                                # (H*N, H*D)
    add("mask_out", (r[:, None] // N_TOKENS ==
                     np.arange(D_MODEL)[None, :] // HEAD_DIM
                     ).astype(np.float32))                               # (H*N, D)
    add("collapse", (r[None, :] % N_TOKENS ==
                     np.arange(N_TOKENS)[:, None]).astype(np.float32))   # (N, H*N)
    add("pool", np.kron(np.eye(BATCH, dtype=np.float32),
                        np.full((1, SEQ_LEN), 1.0 / SEQ_LEN, np.float32)))
    add("cls_w", params["cls_w"])
    add("cls_b", params["cls_b"])

    for li, layer in enumerate(params["layers"]):
        (wqkv_g, bqkv_g, wo, bo, g1, b1n,
         w1, b1, w2, b2, g2, b2n) = _prep_layer_np(layer)
        add(f"L{li}_wqkv_g", wqkv_g)
        add(f"L{li}_bqkv_g", bqkv_g)
        add(f"L{li}_wo", wo)
        add(f"L{li}_bo", bo)
        add(f"L{li}_ln1_g", g1)
        add(f"L{li}_ln1_b", b1n)
        add(f"L{li}_w1", w1)
        add(f"L{li}_b1", b1)
        add(f"L{li}_w2", w2)
        add(f"L{li}_b2", b2)
        add(f"L{li}_ln2_g", g2)
        add(f"L{li}_ln2_b", b2n)

    slab = jnp.asarray(np.concatenate(blocks, axis=0))
    return slab, entries


# ----------------------------- params ----------------------------------------
def sinusoidal_pe(seq_len, d_model):
    pos = jnp.arange(seq_len, dtype=jnp.float32)[:, None]
    i = jnp.arange(0, d_model, 2, dtype=jnp.float32)
    div = jnp.exp(-math.log(10000.0) * i / d_model)
    pe = jnp.zeros((seq_len, d_model), jnp.float32)
    pe = pe.at[:, 0::2].set(jnp.sin(pos * div))
    pe = pe.at[:, 1::2].set(jnp.cos(pos * div))
    return pe


def init_params(key):
    def normal(k, shape, scale=0.02):
        return (scale * jax.random.normal(k, shape)).astype(jnp.float32)

    keys = jax.random.split(key, 3 + NUM_ENCODER_LAYERS)
    params = {
        "embedding": normal(keys[0], (VOCAB_SIZE, D_MODEL), scale=1.0),
        "pe": sinusoidal_pe(SEQ_LEN, D_MODEL),
        "cls_w": normal(keys[1], (D_MODEL, NUM_CLASSES)),
        "cls_b": jnp.zeros((1, NUM_CLASSES), jnp.float32),
        "layers": [],
    }
    for li in range(NUM_ENCODER_LAYERS):
        lk = jax.random.split(keys[3 + li], 6)
        layer = (
            normal(lk[0], (D_MODEL, D_MODEL)), jnp.zeros((1, D_MODEL), jnp.float32),   # Wq, bq
            normal(lk[1], (D_MODEL, D_MODEL)), jnp.zeros((1, D_MODEL), jnp.float32),   # Wk, bk
            normal(lk[2], (D_MODEL, D_MODEL)), jnp.zeros((1, D_MODEL), jnp.float32),   # Wv, bv
            normal(lk[3], (D_MODEL, D_MODEL)), jnp.zeros((1, D_MODEL), jnp.float32),   # Wo, bo
            jnp.ones((1, D_MODEL), jnp.float32), jnp.zeros((1, D_MODEL), jnp.float32), # LN1 g,b
            normal(lk[4], (D_MODEL, FF_DIM)), jnp.zeros((1, FF_DIM), jnp.float32),     # W1, b1
            normal(lk[5], (FF_DIM, D_MODEL)), jnp.zeros((1, D_MODEL), jnp.float32),    # W2, b2
            jnp.ones((1, D_MODEL), jnp.float32), jnp.zeros((1, D_MODEL), jnp.float32), # LN2 g,b
        )
        params["layers"].append(layer)
    return params


# --------------------------- pure-JAX reference ------------------------------
def _ref_encoder(x, p):
    (wq, bq, wk, bk, wv, bv, wo, bo, g1, b1n, w1, b1, w2, b2, g2, b2n) = p

    def mha(xb):
        q, k, v = xb @ wq + bq, xb @ wk + bk, xb @ wv + bv
        outs = []
        for h in range(NUM_HEADS):
            sl = slice(h * HEAD_DIM, (h + 1) * HEAD_DIM)
            s = (q[:, sl] @ k[:, sl].T) / math.sqrt(HEAD_DIM)
            outs.append(jax.nn.softmax(s, axis=-1) @ v[:, sl])
        return jnp.concatenate(outs, axis=-1) @ wo + bo

    def block(xb):
        x1 = _layernorm(xb + mha(xb), g1, b1n)
        ff = jax.nn.relu(x1 @ w1 + b1) @ w2 + b2
        return _layernorm(x1 + ff, g2, b2n)

    return jax.vmap(block)(x)


def _ref_forward(tokens, params):
    x = params["embedding"][tokens] * math.sqrt(D_MODEL) + params["pe"][None]
    for layer in params["layers"]:
        x = _ref_encoder(x, layer)
    return jnp.mean(x, axis=1) @ params["cls_w"] + params["cls_b"]


# ------------------------------- main ----------------------------------------
if __name__ == "__main__":
    key = jax.random.PRNGKey(0)
    pkey, tkey = jax.random.split(key)
    params = init_params(pkey)
    tokens = jax.random.randint(tkey, (BATCH, SEQ_LEN), 0, VOCAB_SIZE,
                                dtype=jnp.int32)

    # host-side packing happens ONCE; the jitted forward only launches the kernel
    slab, entries = pack_params(params)
    forward = jax.jit(make_forward(entries))

    logits = jax.block_until_ready(forward(tokens, slab))

    ref = _ref_forward(tokens, params)
    assert logits.shape == (BATCH, NUM_CLASSES)
    assert jnp.all(jnp.isfinite(logits))
    # softmax uses the EUP approximate reciprocal (pl.reciprocal(approx=True));
    # observed error is far below this tolerance.
    assert jnp.allclose(logits, ref, atol=1e-3, rtol=1e-3), (logits, ref)

    print("KERNEL_OK")
</pallas_src>

<mosaic_0001>
module attributes {stable_mosaic.version = 11 : i64} {
  func.func @kernel(%arg0: memref<16x1xi32, #tpu.memory_space<vmem>>, %arg1: memref<1016x128xf32, #tpu.memory_space<vmem>>, %arg2: memref<2x4xf32, #tpu.memory_space<vmem>>) attributes {dimension_semantics = [], scalar_prefetch = 0 : i64, scratch_operands = 0 : i64, tpu.core_type = #tpu.core_type<tc>} {
    %c0 = arith.constant 0 : index
    %c0_0 = arith.constant 0 : index
    %0 = vector.load %arg0[%c0, %c0_0] : memref<16x1xi32, #tpu.memory_space<vmem>>, vector<16x1xi32>
    %1 = tpu.iota {dimensions = array<i32: 1>} : vector<16x50xi32>
    %2 = vector.broadcast %0 : vector<16x1xi32> to vector<16x50xi32>
    %3 = arith.cmpi eq, %1, %2 : vector<16x50xi32>
    %4 = arith.extui %3 : vector<16x50xi1> to vector<16x50xi32>
    %5 = arith.sitofp %4 : vector<16x50xi32> to vector<16x50xf32>
    %c0_1 = arith.constant 0 : index
    %c0_2 = arith.constant 0 : index
    %6 = vector.load %arg1[%c0_1, %c0_2] : memref<1016x128xf32, #tpu.memory_space<vmem>>, vector<50x32xf32>
    %cst = arith.constant dense<0.000000e+00> : vector<16x32xf32>
    %7 = tpu.matmul %5, %6, %cst {dimension_numbers = #tpu.dot_dimension_numbers<[1], [0], [0], [1], [0, 0, 1, 1], [], []>} : vector<16x50xf32>, vector<50x32xf32>, vector<16x32xf32> -> vector<16x32xf32>
    %c56 = arith.constant 56 : index
    %c0_3 = arith.constant 0 : index
    %8 = vector.load %arg1[%c56, %c0_3] : memref<1016x128xf32, #tpu.memory_space<vmem>>, vector<16x32xf32>
    %9 = arith.addf %7, %8 : vector<16x32xf32>
    %c72 = arith.constant 72 : index
    %c0_4 = arith.constant 0 : index
    %10 = vector.load %arg1[%c72, %c0_4] : memref<1016x128xf32, #tpu.memory_space<vmem>>, vector<64x128xf32>
    %c136 = arith.constant 136 : index
    %c0_5 = arith.constant 0 : index
    %11 = vector.load %arg1[%c136, %c0_5] : memref<1016x128xf32, #tpu.memory_space<vmem>>, vector<64x32xf32>
    %c200 = arith.constant 200 : index
    %c0_6 = arith.constant 0 : index
    %12 = vector.load %arg1[%c200, %c0_6] : memref<1016x128xf32, #tpu.memory_space<vmem>>, vector<16x64xf32>
    %c264 = arith.constant 264 : index
    %c0_7 = arith.constant 0 : index
    %13 = vector.load %arg1[%c264, %c0_7] : memref<1016x128xf32, #tpu.memory_space<vmem>>, vector<128x24xf32>
    %c392 = arith.constant 392 : index
    %c0_8 = arith.constant 0 : index
    %14 = vector.load %arg1[%c392, %c0_8] : memref<1016x128xf32, #tpu.memory_space<vmem>>, vector<64x24xf32>
    %c456 = arith.constant 456 : index
    %c0_9 = arith.constant 0 : index
    %15 = vector.load %arg1[%c456, %c0_9] : memref<1016x128xf32, #tpu.memory_space<vmem>>, vector<32x32xf32>
    %c488 = arith.constant 488 : index
    %c0_10 = arith.constant 0 : index
    %16 = vector.load %arg1[%c488, %c0_10] : memref<1016x128xf32, #tpu.memory_space<vmem>>, vector<1x32xf32>
    %c496 = arith.constant 496 : index
    %c0_11 = arith.constant 0 : index
    %17 = vector.load %arg1[%c496, %c0_11] : memref<1016x128xf32, #tpu.memory_space<vmem>>, vector<1x32xf32>
    %c504 = arith.constant 504 : index
    %c0_12 = arith.constant 0 : index
    %18 = vector.load %arg1[%c504, %c0_12] : memref<1016x128xf32, #tpu.memory_space<vmem>>, vector<1x32xf32>
    %c512 = arith.constant 512 : index
    %c0_13 = arith.constant 0 : index
    %19 = vector.load %arg1[%c512, %c0_13] : memref<1016x128xf32, #tpu.memory_space<vmem>>, vector<32x64xf32>
    %c544 = arith.constant 544 : index
    %c0_14 = arith.constant 0 : index
    %20 = vector.load %arg1[%c544, %c0_14] : memref<1016x128xf32, #tpu.memory_space<vmem>>, vector<1x64xf32>
    %c552 = arith.constant 552 : index
    %c0_15 = arith.constant 0 : index
    %21 = vector.load %arg1[%c552, %c0_15] : memref<1016x128xf32, #tpu.memory_space<vmem>>, vector<64x32xf32>
    %c616 = arith.constant 616 : index
    %c0_16 = arith.constant 0 : index
    %22 = vector.load %arg1[%c616, %c0_16] : memref<1016x128xf32, #tpu.memory_space<vmem>>, vector<1x32xf32>
    %c624 = arith.constant 624 : index
    %c0_17 = arith.constant 0 : index
    %23 = vector.load %arg1[%c624, %c0_17] : memref<1016x128xf32, #tpu.memory_space<vmem>>, vector<1x32xf32>
    %c632 = arith.constant 632 : index
    %c0_18 = arith.constant 0 : index
    %24 = vector.load %arg1[%c632, %c0_18] : memref<1016x128xf32, #tpu.memory_space<vmem>>, vector<1x32xf32>
    %25 = tpu.concatenate %9, %9, %9, %9 in 0 : vector<16x32xf32>, vector<16x32xf32>, vector<16x32xf32>, vector<16x32xf32> -> vector<64x32xf32>
    %26 = tpu.concatenate %25, %25, %25, %25 in 1 : vector<64x32xf32>, vector<64x32xf32>, vector<64x32xf32>, vector<64x32xf32> -> vector<64x128xf32>
    %27 = arith.mulf %26, %10 : vector<64x128xf32>
    %cst_19 = arith.constant dense<0.000000e+00> : vector<64x24xf32>
    %28 = tpu.matmul %27, %13, %cst_19 {dimension_numbers = #tpu.dot_dimension_numbers<[1], [0], [0], [1], [0, 0, 1, 1], [], []>} : vector<64x128xf32>, vector<128x24xf32>, vector<64x24xf32> -> vector<64x24xf32>
    %29 = arith.addf %28, %14 : vector<64x24xf32>
    %30 = vector.extract_strided_slice %29 {offsets = [0, 0], sizes = [64, 8], strides = [1, 1]} : vector<64x24xf32> to vector<64x8xf32>
    %31 = vector.shape_cast %30 : vector<64x8xf32> to vector<8x8x8xf32>
    %32 = vector.extract_strided_slice %29 {offsets = [0, 8], sizes = [64, 8], strides = [1, 1]} : vector<64x24xf32> to vector<64x8xf32>
    %33 = vector.shape_cast %32 : vector<64x8xf32> to vector<8x8x8xf32>
    %34 = vector.extract_strided_slice %29 {offsets = [0, 16], sizes = [64, 8], strides = [1, 1]} : vector<64x24xf32> to vector<64x8xf32>
    %35 = vector.shape_cast %34 : vector<64x8xf32> to vector<8x8x8xf32>
    "tpu.trace_start"() <{level = 10 : i32, message = "gqd,gkd->gqk"}> : () -> ()
    %cst_20 = arith.constant dense<0.000000e+00> : vector<8x8x8xf32>
    %36 = tpu.matmul %31, %33, %cst_20 {dimension_numbers = #tpu.dot_dimension_numbers<[2], [2], [1], [1], [0, 0, 0, 1, 1, 1], [0], [0]>} : vector<8x8x8xf32>, vector<8x8x8xf32>, vector<8x8x8xf32> -> vector<8x8x8xf32>
    "tpu.trace_stop"() : () -> ()
    %cst_21 = arith.constant dense<0xFF800000> : vector<8x8xf32>
    %37 = vector.multi_reduction <maximumf>, %36, %cst_21 [2] : vector<8x8x8xf32> to vector<8x8xf32>
    %38 = vector.shape_cast %37 : vector<8x8xf32> to vector<8x8x1xf32>
    %39 = vector.broadcast %38 : vector<8x8x1xf32> to vector<8x8x8xf32>
    %40 = arith.subf %36, %39 : vector<8x8x8xf32>
    %41 = math.exp %40 : vector<8x8x8xf32>
    %cst_22 = arith.constant dense<0.000000e+00> : vector<8x8xf32>
    %42 = vector.multi_reduction <add>, %41, %cst_22 [2] : vector<8x8x8xf32> to vector<8x8xf32>
    %43 = vector.shape_cast %42 : vector<8x8xf32> to vector<8x8x1xf32>
    %44 = tpu.reciprocal %43 {approx = true} : vector<8x8x1xf32> -> vector<8x8x1xf32>
    %45 = vector.broadcast %44 : vector<8x8x1xf32> to vector<8x8x8xf32>
    %46 = arith.mulf %41, %45 : vector<8x8x8xf32>
    "tpu.trace_start"() <{level = 10 : i32, message = "gqk,gkd->gqd"}> : () -> ()
    %cst_23 = arith.constant dense<0.000000e+00> : vector<8x8x8xf32>
    %47 = tpu.matmul %46, %35, %cst_23 {dimension_numbers = #tpu.dot_dimension_numbers<[2], [1], [1], [2], [0, 0, 0, 1, 1, 2], [0], [0]>} : vector<8x8x8xf32>, vector<8x8x8xf32>, vector<8x8x8xf32> -> vector<8x8x8xf32>
    "tpu.trace_stop"() : () -> ()
    %48 = vector.shape_cast %47 : vector<8x8x8xf32> to vector<64x8xf32>
    %49 = tpu.concatenate %48, %48, %48, %48 in 1 : vector<64x8xf32>, vector<64x8xf32>, vector<64x8xf32>, vector<64x8xf32> -> vector<64x32xf32>
    %50 = arith.mulf %49, %11 : vector<64x32xf32>
    %cst_24 = arith.constant dense<0.000000e+00> : vector<64x32xf32>
    %51 = tpu.matmul %50, %15, %cst_24 {dimension_numbers = #tpu.dot_dimension_numbers<[1], [0], [0], [1], [0, 0, 1, 1], [], []>} : vector<64x32xf32>, vector<32x32xf32>, vector<64x32xf32> -> vector<64x32xf32>
    %cst_25 = arith.constant dense<0.000000e+00> : vector<16x32xf32>
    %52 = tpu.matmul %12, %51, %cst_25 {dimension_numbers = #tpu.dot_dimension_numbers<[1], [0], [0], [1], [0, 0, 1, 1], [], []>} : vector<16x64xf32>, vector<64x32xf32>, vector<16x32xf32> -> vector<16x32xf32>
    %53 = vector.broadcast %16 : vector<1x32xf32> to vector<16x32xf32>
    %54 = arith.addf %52, %53 : vector<16x32xf32>
    %55 = arith.addf %9, %54 : vector<16x32xf32>
    %cst_26 = arith.constant dense<0.000000e+00> : vector<16xf32>
    %56 = vector.multi_reduction <add>, %55, %cst_26 [1] : vector<16x32xf32> to vector<16xf32>
    %57 = vector.shape_cast %56 : vector<16xf32> to vector<16x1xf32>
    %cst_27 = arith.constant 3.200000e+01 : f32
    %58 = vector.broadcast %cst_27 : f32 to vector<16x1xf32>
    %59 = arith.divf %57, %58 : vector<16x1xf32>
    %60 = vector.broadcast %59 : vector<16x1xf32> to vector<16x32xf32>
    %61 = arith.subf %55, %60 : vector<16x32xf32>
    %62 = arith.mulf %61, %61 : vector<16x32xf32>
    %cst_28 = arith.constant dense<0.000000e+00> : vector<16xf32>
    %63 = vector.multi_reduction <add>, %62, %cst_28 [1] : vector<16x32xf32> to vector<16xf32>
    %64 = vector.shape_cast %63 : vector<16xf32> to vector<16x1xf32>
    %cst_29 = arith.constant 3.200000e+01 : f32
    %65 = vector.broadcast %cst_29 : f32 to vector<16x1xf32>
    %66 = arith.divf %64, %65 : vector<16x1xf32>
    %67 = vector.broadcast %59 : vector<16x1xf32> to vector<16x32xf32>
    %68 = arith.subf %55, %67 : vector<16x32xf32>
    %cst_30 = arith.constant 9.99999974E-6 : f32
    %69 = vector.broadcast %cst_30 : f32 to vector<16x1xf32>
    %70 = arith.addf %66, %69 : vector<16x1xf32>
    %71 = math.rsqrt %70 : vector<16x1xf32>
    %72 = vector.broadcast %71 : vector<16x1xf32> to vector<16x32xf32>
    %73 = arith.mulf %68, %72 : vector<16x32xf32>
    %74 = vector.broadcast %17 : vector<1x32xf32> to vector<16x32xf32>
    %75 = arith.mulf %73, %74 : vector<16x32xf32>
    %76 = vector.broadcast %18 : vector<1x32xf32> to vector<16x32xf32>
    %77 = arith.addf %75, %76 : vector<16x32xf32>
    %cst_31 = arith.constant dense<0.000000e+00> : vector<16x64xf32>
    %78 = tpu.matmul %77, %19, %cst_31 {dimension_numbers = #tpu.dot_dimension_numbers<[1], [0], [0], [1], [0, 0, 1, 1], [], []>} : vector<16x32xf32>, vector<32x64xf32>, vector<16x64xf32> -> vector<16x64xf32>
    %79 = vector.broadcast %20 : vector<1x64xf32> to vector<16x64xf32>
    %80 = arith.addf %78, %79 : vector<16x64xf32>
    %cst_32 = arith.constant 0.000000e+00 : f32
    %81 = vector.broadcast %cst_32 : f32 to vector<16x64xf32>
    %82 = arith.maximumf %80, %81 : vector<16x64xf32>
    %cst_33 = arith.constant dense<0.000000e+00> : vector<16x32xf32>
    %83 = tpu.matmul %82, %21, %cst_33 {dimension_numbers = #tpu.dot_dimension_numbers<[1], [0], [0], [1], [0, 0, 1, 1], [], []>} : vector<16x64xf32>, vector<64x32xf32>, vector<16x32xf32> -> vector<16x32xf32>
    %84 = vector.broadcast %22 : vector<1x32xf32> to vector<16x32xf32>
    %85 = arith.addf %83, %84 : vector<16x32xf32>
    %86 = arith.addf %77, %85 : vector<16x32xf32>
    %cst_34 = arith.constant dense<0.000000e+00> : vector<16xf32>
    %87 = vector.multi_reduction <add>, %86, %cst_34 [1] : vector<16x32xf32> to vector<16xf32>
    %88 = vector.shape_cast %87 : vector<16xf32> to vector<16x1xf32>
    %cst_35 = arith.constant 3.200000e+01 : f32
    %89 = vector.broadcast %cst_35 : f32 to vector<16x1xf32>
    %90 = arith.divf %88, %89 : vector<16x1xf32>
    %91 = vector.broadcast %90 : vector<16x1xf32> to vector<16x32xf32>
    %92 = arith.subf %86, %91 : vector<16x32xf32>
    %93 = arith.mulf %92, %92 : vector<16x32xf32>
    %cst_36 = arith.constant dense<0.000000e+00> : vector<16xf32>
    %94 = vector.multi_reduction <add>, %93, %cst_36 [1] : vector<16x32xf32> to vector<16xf32>
    %95 = vector.shape_cast %94 : vector<16xf32> to vector<16x1xf32>
    %cst_37 = arith.constant 3.200000e+01 : f32
    %96 = vector.broadcast %cst_37 : f32 to vector<16x1xf32>
    %97 = arith.divf %95, %96 : vector<16x1xf32>
    %98 = vector.broadcast %90 : vector<16x1xf32> to vector<16x32xf32>
    %99 = arith.subf %86, %98 : vector<16x32xf32>
    %cst_38 = arith.constant 9.99999974E-6 : f32
    %100 = vector.broadcast %cst_38 : f32 to vector<16x1xf32>
    %101 = arith.addf %97, %100 : vector<16x1xf32>
    %102 = math.rsqrt %101 : vector<16x1xf32>
    %103 = vector.broadcast %102 : vector<16x1xf32> to vector<16x32xf32>
    %104 = arith.mulf %99, %103 : vector<16x32xf32>
    %105 = vector.broadcast %23 : vector<1x32xf32> to vector<16x32xf32>
    %106 = arith.mulf %104, %105 : vector<16x32xf32>
    %107 = vector.broadcast %24 : vector<1x32xf32> to vector<16x32xf32>
    %108 = arith.addf %106, %107 : vector<16x32xf32>
    %c640 = arith.constant 640 : index
    %c0_39 = arith.constant 0 : index
    %109 = vector.load %arg1[%c640, %c0_39] : memref<1016x128xf32, #tpu.memory_space<vmem>>, vector<128x24xf32>
    %c768 = arith.constant 768 : index
    %c0_40 = arith.constant 0 : index
    %110 = vector.load %arg1[%c768, %c0_40] : memref<1016x128xf32, #tpu.memory_space<vmem>>, vector<64x24xf32>
    %c832 = arith.constant 832 : index
    %c0_41 = arith.constant 0 : index
    %111 = vector.load %arg1[%c832, %c0_41] : memref<1016x128xf32, #tpu.memory_space<vmem>>, vector<32x32xf32>
    %c864 = arith.constant 864 : index
    %c0_42 = arith.constant 0 : index
    %112 = vector.load %arg1[%c864, %c0_42] : memref<1016x128xf32, #tpu.memory_space<vmem>>, vector<1x32xf32>
    %c872 = arith.constant 872 : index
    %c0_43 = arith.constant 0 : index
    %113 = vector.load %arg1[%c872, %c0_43] : memref<1016x128xf32, #tpu.memory_space<vmem>>, vector<1x32xf32>
    %c880 = arith.constant 880 : index
    %c0_44 = arith.constant 0 : index
    %114 = vector.load %arg1[%c880, %c0_44] : memref<1016x128xf32, #tpu.memory_space<vmem>>, vector<1x32xf32>
    %c888 = arith.constant 888 : index
    %c0_45 = arith.constant 0 : index
    %115 = vector.load %arg1[%c888, %c0_45] : memref<1016x128xf32, #tpu.memory_space<vmem>>, vector<32x64xf32>
    %c920 = arith.constant 920 : index
    %c0_46 = arith.constant 0 : index
    %116 = vector.load %arg1[%c920, %c0_46] : memref<1016x128xf32, #tpu.memory_space<vmem>>, vector<1x64xf32>
    %c928 = arith.constant 928 : index
    %c0_47 = arith.constant 0 : index
    %117 = vector.load %arg1[%c928, %c0_47] : memref<1016x128xf32, #tpu.memory_space<vmem>>, vector<64x32xf32>
    %c992 = arith.constant 992 : index
    %c0_48 = arith.constant 0 : index
    %118 = vector.load %arg1[%c992, %c0_48] : memref<1016x128xf32, #tpu.memory_space<vmem>>, vector<1x32xf32>
    %c1000 = arith.constant 1000 : index
    %c0_49 = arith.constant 0 : index
    %119 = vector.load %arg1[%c1000, %c0_49] : memref<1016x128xf32, #tpu.memory_space<vmem>>, vector<1x32xf32>
    %c1008 = arith.constant 1008 : index
    %c0_50 = arith.constant 0 : index
    %120 = vector.load %arg1[%c1008, %c0_50] : memref<1016x128xf32, #tpu.memory_space<vmem>>, vector<1x32xf32>
    %121 = tpu.concatenate %108, %108, %108, %108 in 0 : vector<16x32xf32>, vector<16x32xf32>, vector<16x32xf32>, vector<16x32xf32> -> vector<64x32xf32>
    %122 = tpu.concatenate %121, %121, %121, %121 in 1 : vector<64x32xf32>, vector<64x32xf32>, vector<64x32xf32>, vector<64x32xf32> -> vector<64x128xf32>
    %123 = arith.mulf %122, %10 : vector<64x128xf32>
    %cst_51 = arith.constant dense<0.000000e+00> : vector<64x24xf32>
    %124 = tpu.matmul %123, %109, %cst_51 {dimension_numbers = #tpu.dot_dimension_numbers<[1], [0], [0], [1], [0, 0, 1, 1], [], []>} : vector<64x128xf32>, vector<128x24xf32>, vector<64x24xf32> -> vector<64x24xf32>
    %125 = arith.addf %124, %110 : vector<64x24xf32>
    %126 = vector.extract_strided_slice %125 {offsets = [0, 0], sizes = [64, 8], strides = [1, 1]} : vector<64x24xf32> to vector<64x8xf32>
    %127 = vector.shape_cast %126 : vector<64x8xf32> to vector<8x8x8xf32>
    %128 = vector.extract_strided_slice %125 {offsets = [0, 8], sizes = [64, 8], strides = [1, 1]} : vector<64x24xf32> to vector<64x8xf32>
    %129 = vector.shape_cast %128 : vector<64x8xf32> to vector<8x8x8xf32>
    %130 = vector.extract_strided_slice %125 {offsets = [0, 16], sizes = [64, 8], strides = [1, 1]} : vector<64x24xf32> to vector<64x8xf32>
    %131 = vector.shape_cast %130 : vector<64x8xf32> to vector<8x8x8xf32>
    "tpu.trace_start"() <{level = 10 : i32, message = "gqd,gkd->gqk"}> : () -> ()
    %cst_52 = arith.constant dense<0.000000e+00> : vector<8x8x8xf32>
    %132 = tpu.matmul %127, %129, %cst_52 {dimension_numbers = #tpu.dot_dimension_numbers<[2], [2], [1], [1], [0, 0, 0, 1, 1, 1], [0], [0]>} : vector<8x8x8xf32>, vector<8x8x8xf32>, vector<8x8x8xf32> -> vector<8x8x8xf32>
    "tpu.trace_stop"() : () -> ()
    %cst_53 = arith.constant dense<0xFF800000> : vector<8x8xf32>
    %133 = vector.multi_reduction <maximumf>, %132, %cst_53 [2] : vector<8x8x8xf32> to vector<8x8xf32>
    %134 = vector.shape_cast %133 : vector<8x8xf32> to vector<8x8x1xf32>
    %135 = vector.broadcast %134 : vector<8x8x1xf32> to vector<8x8x8xf32>
    %136 = arith.subf %132, %135 : vector<8x8x8xf32>
    %137 = math.exp %136 : vector<8x8x8xf32>
    %cst_54 = arith.constant dense<0.000000e+00> : vector<8x8xf32>
    %138 = vector.multi_reduction <add>, %137, %cst_54 [2] : vector<8x8x8xf32> to vector<8x8xf32>
    %139 = vector.shape_cast %138 : vector<8x8xf32> to vector<8x8x1xf32>
    %140 = tpu.reciprocal %139 {approx = true} : vector<8x8x1xf32> -> vector<8x8x1xf32>
    %141 = vector.broadcast %140 : vector<8x8x1xf32> to vector<8x8x8xf32>
    %142 = arith.mulf %137, %141 : vector<8x8x8xf32>
    "tpu.trace_start"() <{level = 10 : i32, message = "gqk,gkd->gqd"}> : () -> ()
    %cst_55 = arith.constant dense<0.000000e+00> : vector<8x8x8xf32>
    %143 = tpu.matmul %142, %131, %cst_55 {dimension_numbers = #tpu.dot_dimension_numbers<[2], [1], [1], [2], [0, 0, 0, 1, 1, 2], [0], [0]>} : vector<8x8x8xf32>, vector<8x8x8xf32>, vector<8x8x8xf32> -> vector<8x8x8xf32>
    "tpu.trace_stop"() : () -> ()
    %144 = vector.shape_cast %143 : vector<8x8x8xf32> to vector<64x8xf32>
    %145 = tpu.concatenate %144, %144, %144, %144 in 1 : vector<64x8xf32>, vector<64x8xf32>, vector<64x8xf32>, vector<64x8xf32> -> vector<64x32xf32>
    %146 = arith.mulf %145, %11 : vector<64x32xf32>
    %cst_56 = arith.constant dense<0.000000e+00> : vector<64x32xf32>
    %147 = tpu.matmul %146, %111, %cst_56 {dimension_numbers = #tpu.dot_dimension_numbers<[1], [0], [0], [1], [0, 0, 1, 1], [], []>} : vector<64x32xf32>, vector<32x32xf32>, vector<64x32xf32> -> vector<64x32xf32>
    %cst_57 = arith.constant dense<0.000000e+00> : vector<16x32xf32>
    %148 = tpu.matmul %12, %147, %cst_57 {dimension_numbers = #tpu.dot_dimension_numbers<[1], [0], [0], [1], [0, 0, 1, 1], [], []>} : vector<16x64xf32>, vector<64x32xf32>, vector<16x32xf32> -> vector<16x32xf32>
    %149 = vector.broadcast %112 : vector<1x32xf32> to vector<16x32xf32>
    %150 = arith.addf %148, %149 : vector<16x32xf32>
    %151 = arith.addf %108, %150 : vector<16x32xf32>
    %cst_58 = arith.constant dense<0.000000e+00> : vector<16xf32>
    %152 = vector.multi_reduction <add>, %151, %cst_58 [1] : vector<16x32xf32> to vector<16xf32>
    %153 = vector.shape_cast %152 : vector<16xf32> to vector<16x1xf32>
    %cst_59 = arith.constant 3.200000e+01 : f32
    %154 = vector.broadcast %cst_59 : f32 to vector<16x1xf32>
    %155 = arith.divf %153, %154 : vector<16x1xf32>
    %156 = vector.broadcast %155 : vector<16x1xf32> to vector<16x32xf32>
    %157 = arith.subf %151, %156 : vector<16x32xf32>
    %158 = arith.mulf %157, %157 : vector<16x32xf32>
    %cst_60 = arith.constant dense<0.000000e+00> : vector<16xf32>
    %159 = vector.multi_reduction <add>, %158, %cst_60 [1] : vector<16x32xf32> to vector<16xf32>
    %160 = vector.shape_cast %159 : vector<16xf32> to vector<16x1xf32>
    %cst_61 = arith.constant 3.200000e+01 : f32
    %161 = vector.broadcast %cst_61 : f32 to vector<16x1xf32>
    %162 = arith.divf %160, %161 : vector<16x1xf32>
    %163 = vector.broadcast %155 : vector<16x1xf32> to vector<16x32xf32>
    %164 = arith.subf %151, %163 : vector<16x32xf32>
    %cst_62 = arith.constant 9.99999974E-6 : f32
    %165 = vector.broadcast %cst_62 : f32 to vector<16x1xf32>
    %166 = arith.addf %162, %165 : vector<16x1xf32>
    %167 = math.rsqrt %166 : vector<16x1xf32>
    %168 = vector.broadcast %167 : vector<16x1xf32> to vector<16x32xf32>
    %169 = arith.mulf %164, %168 : vector<16x32xf32>
    %170 = vector.broadcast %113 : vector<1x32xf32> to vector<16x32xf32>
    %171 = arith.mulf %169, %170 : vector<16x32xf32>
    %172 = vector.broadcast %114 : vector<1x32xf32> to vector<16x32xf32>
    %173 = arith.addf %171, %172 : vector<16x32xf32>
    %cst_63 = arith.constant dense<0.000000e+00> : vector<16x64xf32>
    %174 = tpu.matmul %173, %115, %cst_63 {dimension_numbers = #tpu.dot_dimension_numbers<[1], [0], [0], [1], [0, 0, 1, 1], [], []>} : vector<16x32xf32>, vector<32x64xf32>, vector<16x64xf32> -> vector<16x64xf32>
    %175 = vector.broadcast %116 : vector<1x64xf32> to vector<16x64xf32>
    %176 = arith.addf %174, %175 : vector<16x64xf32>
    %cst_64 = arith.constant 0.000000e+00 : f32
    %177 = vector.broadcast %cst_64 : f32 to vector<16x64xf32>
    %178 = arith.maximumf %176, %177 : vector<16x64xf32>
    %cst_65 = arith.constant dense<0.000000e+00> : vector<16x32xf32>
    %179 = tpu.matmul %178, %117, %cst_65 {dimension_numbers = #tpu.dot_dimension_numbers<[1], [0], [0], [1], [0, 0, 1, 1], [], []>} : vector<16x64xf32>, vector<64x32xf32>, vector<16x32xf32> -> vector<16x32xf32>
    %180 = vector.broadcast %118 : vector<1x32xf32> to vector<16x32xf32>
    %181 = arith.addf %179, %180 : vector<16x32xf32>
    %182 = arith.addf %173, %181 : vector<16x32xf32>
    %cst_66 = arith.constant dense<0.000000e+00> : vector<16xf32>
    %183 = vector.multi_reduction <add>, %182, %cst_66 [1] : vector<16x32xf32> to vector<16xf32>
    %184 = vector.shape_cast %183 : vector<16xf32> to vector<16x1xf32>
    %cst_67 = arith.constant 3.200000e+01 : f32
    %185 = vector.broadcast %cst_67 : f32 to vector<16x1xf32>
    %186 = arith.divf %184, %185 : vector<16x1xf32>
    %187 = vector.broadcast %186 : vector<16x1xf32> to vector<16x32xf32>
    %188 = arith.subf %182, %187 : vector<16x32xf32>
    %189 = arith.mulf %188, %188 : vector<16x32xf32>
    %cst_68 = arith.constant dense<0.000000e+00> : vector<16xf32>
    %190 = vector.multi_reduction <add>, %189, %cst_68 [1] : vector<16x32xf32> to vector<16xf32>
    %191 = vector.shape_cast %190 : vector<16xf32> to vector<16x1xf32>
    %cst_69 = arith.constant 3.200000e+01 : f32
    %192 = vector.broadcast %cst_69 : f32 to vector<16x1xf32>
    %193 = arith.divf %191, %192 : vector<16x1xf32>
    %194 = vector.broadcast %186 : vector<16x1xf32> to vector<16x32xf32>
    %195 = arith.subf %182, %194 : vector<16x32xf32>
    %cst_70 = arith.constant 9.99999974E-6 : f32
    %196 = vector.broadcast %cst_70 : f32 to vector<16x1xf32>
    %197 = arith.addf %193, %196 : vector<16x1xf32>
    %198 = math.rsqrt %197 : vector<16x1xf32>
    %199 = vector.broadcast %198 : vector<16x1xf32> to vector<16x32xf32>
    %200 = arith.mulf %195, %199 : vector<16x32xf32>
    %201 = vector.broadcast %119 : vector<1x32xf32> to vector<16x32xf32>
    %202 = arith.mulf %200, %201 : vector<16x32xf32>
    %203 = vector.broadcast %120 : vector<1x32xf32> to vector<16x32xf32>
    %204 = arith.addf %202, %203 : vector<16x32xf32>
    %c216 = arith.constant 216 : index
    %c0_71 = arith.constant 0 : index
    %205 = vector.load %arg1[%c216, %c0_71] : memref<1016x128xf32, #tpu.memory_space<vmem>>, vector<2x16xf32>
    %cst_72 = arith.constant dense<0.000000e+00> : vector<2x32xf32>
    %206 = tpu.matmul %205, %204, %cst_72 {dimension_numbers = #tpu.dot_dimension_numbers<[1], [0], [0], [1], [0, 0, 1, 1], [], []>} : vector<2x16xf32>, vector<16x32xf32>, vector<2x32xf32> -> vector<2x32xf32>
    %c224 = arith.constant 224 : index
    %c0_73 = arith.constant 0 : index
    %207 = vector.load %arg1[%c224, %c0_73] : memref<1016x128xf32, #tpu.memory_space<vmem>>, vector<32x4xf32>
    %cst_74 = arith.constant dense<0.000000e+00> : vector<2x4xf32>
    %208 = tpu.matmul %206, %207, %cst_74 {dimension_numbers = #tpu.dot_dimension_numbers<[1], [0], [0], [1], [0, 0, 1, 1], [], []>} : vector<2x32xf32>, vector<32x4xf32>, vector<2x4xf32> -> vector<2x4xf32>
    %c256 = arith.constant 256 : index
    %c0_75 = arith.constant 0 : index
    %209 = vector.load %arg1[%c256, %c0_75] : memref<1016x128xf32, #tpu.memory_space<vmem>>, vector<1x4xf32>
    %210 = vector.broadcast %209 : vector<1x4xf32> to vector<2x4xf32>
    %211 = arith.addf %208, %210 : vector<2x4xf32>
    %c0_76 = arith.constant 0 : index
    %c0_77 = arith.constant 0 : index
    %212 = vector.load %arg2[%c0_76, %c0_77] : memref<2x4xf32, #tpu.memory_space<vmem>>, vector<2x4xf32>
    tpu.vector_store %arg2[%c0_76, %c0_77], %211 {strides = array<i32>} : memref<2x4xf32, #tpu.memory_space<vmem>>, vector<2x4xf32>,
    return
  }
}

</mosaic_0001>

<bundles_post_ra>
// kernel: forward.1
= control target key start
LH: loop header
LB: loop body
LE: loop exit
PB: predicated region body
PF: predicated region fallthrough
CT: control target
= control target key end

     0   :  { %7 = vsyncpa [#allocation3], 0  ;;  %s6176_s0 = inlined_call_operand.vmem [shape: s32[16,1], index: 0, kind: input, shape index: {}]   ;;  %s6177_s1 = inlined_call_operand.hbm [shape: f32[1016,128], index: 1, kind: input, shape index: {}]   ;;  %s6178_s2 = inlined_call_operand.hbm [shape: f32[2,4], index: 2, kind: output, shape index: {}]  }
   0x1   :  { %8 = vsyncpa [#allocation4], 0  ;;  %s5547_s9 = smov [#allocation2]   ;;  %s5499_s13 = scalar_lea.hbm %s6177_s1, 16256 }
   0x2   :  { %s16_s10 = sshll.u32 %s5547_s9, 4  ;;  %p5500_p0 = scmp.ne.s32.totalorder %s6177_s1, %s5499_s13  ;;  %s17_s10 = int_to_ptr.vmem [resolvable:$true] %s16_s10 }
   0x3   :  { %p5503_p1 = scmp.lt.u32.totalorder %s5499_s13, %s6177_s1 }
   0x5   :  { %p5505_p2 = pnand %p5503_p1, %p5500_p0 }
   0x7   :  { %5508 = shalt.err (!%p5505_p2)
}
   0x8   :  { %s5509_s18 = scalar_lea.vmem %s17_s10, 16256  ;;  %p5514_p4 = scmp.lt.s32.totalorder %s17_s10, %s17_s10 }
   0x9   :  { %p5510_p3 = scmp.ne.s32.totalorder %s17_s10, %s5509_s18  ;;  %p5515_p5 = scmp.lt.s32.totalorder %s5509_s18, %s5509_s18 }
   0xb   :  { %p5516_p6 = por %p5515_p5, %p5514_p4 }
   0xd   :  { %p5517_p7 = pnand %p5516_p6, %p5510_p3 }
   0xf   :  { %5520 = shalt.err (!%p5517_p7)
}
  0x10   :  { %s5548_s19 = smov 128   ;;  %s5549_s20 = smov 8  }
  0x11   :  { %22 = dma.hbm_to_vmem [thread:$0]  %s6177_s1, 16256, %s17_s10, [#allocation3], %s5548_s19, %s5548_s19, %s5549_s20  }
  0x12   :  { %5543 = dma.done.wait [#allocation3], 16256  }
  0x13   :  { %5544 = vsyncadd [#allocation3], 4294951040  ;;  %v5550_v0 = vmov 0   ;;  %v26_v1 = vld [vmem:[%s6176_s0] sm:$0xff]  ;;  %v43_v3 = vld [vmem:[#allocation2 + $0x8] sm:$0xff]  ;;  %vm58_vm0 = vcmask 1041408   ;;  %v28_v14 = vlaneseq }
  0x14   :  { %5401 = vset.pattern.permute.xlu0 %v5550_v0  ;;  %v42_v2 = vld [vmem:[#allocation2] sm:$0xff]  ;;  %v44_v4 = vld [vmem:[#allocation2 + $0x10] sm:$0xff]  ;;  %v45_v5 = vld [vmem:[#allocation2 + $0x18] sm:$0xff]  ;;  %v5551_v13 = vmov 0.0   ;;  %vm51_vm1 = vcmask 408576   ;;  %s5553_s1 = smov 64  }
  0x15   :  { %31 = vperm.xlu0 %5401, %v26_v1   ;;  %v27_v6 = vld [vmem:[%s6176_s0 + $0x8] sm:$0xff]  ;;  %v5205_v7 = vpack.c.bf16 %v43_v3, %v42_v2  ;;  %v5209_v8 = vpack.c.bf16 %v45_v5, %v44_v4  ;;  %v46_v9 = vld [vmem:[#allocation2 + $0x20] sm:$0xff]  ;;  %v48_v12 = vld [vmem:[#allocation2 + $0x30] sm:$0x3]  ;;  %v29_v15 = vand.u32 127, %v28_v14  ;;  %s5552_s0 = smov 32  }
  0x16   :  { %v47_v10 = vld [vmem:[#allocation2 + $0x28] sm:$0xff]  ;;  %v156_v21 = vld [vmem:[#allocation2 + $0x110] sm:$0xff]  ;;  %v157_v22 = vld [vmem:[#allocation2 + $0x118] sm:$0xff]  ;;  %s5554_s27 = smov 96   ;;  %vm222_vm4 = vcmask 261120   ;;  %vm228_vm5 = vcmask 785408  }
  0x17   :  { %5206 = vmatprep.subr.bf16.mxu0 %v5205_v7  ;;  %v5213_v11 = vpack.c.bf16 %v47_v10, %v46_v9  ;;  %v155_v20 = vld [vmem:[#allocation2 + $0x108] sm:$0xff]  ;;  %v158_v24 = vld [vmem:[#allocation2 + $0x120] sm:$0xff]  ;;  %v160_v27 = vld [vmem:[#allocation2 + $0x130] sm:$0xff]  ;;  %vm225_vm6 = vcmask 523264   ;;  %vm5555_vm7 = vmmov 0   ;;  %s5556_s28 = smov 120  }
  0x18   :  { %5208 = vmatpush3.bf16.msra.mxu0 %v5205_v7  ;;  %v5217_v23 = vpack.c.bf16 %v156_v21, %v155_v20  ;;  %v5221_v25 = vpack.c.bf16 %v158_v24, %v157_v22  ;;  %v159_v26 = vld [vmem:[#allocation2 + $0x128] sm:$0xff]  ;;  %v161_v29 = vld [vmem:[#allocation2 + $0x138] sm:$0xff]  ;;  %v162_v30 = vld [vmem:[#allocation2 + $0x140] sm:$0xff]  ;;  %vm347_vm8 = vcmask 64512   ;;  %s5557_s29 = smov 112   ;;  %s5558_s30 = smov 16  }
  0x19   :  { %34 = vperm.xlu0 %5401, %v27_v6   ;;  %5210 = vmatprep.subr.bf16.mxu0 %v5209_v8  ;;  %v5225_v28 = vpack.c.bf16 %v160_v27, %v159_v26  ;;  %v5229_v31 = vpack.c.bf16 %v162_v30, %v161_v29  ;;  %v163_v32 = vld [vmem:[#allocation2 + $0x148] sm:$0xff]  ;;  %v164_v33 = vld [vmem:[#allocation2 + $0x150] sm:$0xff]  ;;  %v165_v35 = vld [vmem:[#allocation2 + $0x158] sm:$0xff]  ;;  %s5559_s3 = smov 24   ;;  %vm1745_vm9 = vcmask 130048   ;;  %vm1754_vm10 = vcmask 195584  }
  0x1a   :  { %5218 = vmatprep.subr.bf16.mxu1 %v5217_v23  ;;  %v5233_v34 = vpack.c.bf16 %v164_v33, %v163_v32  ;;  %v166_v36 = vld [vmem:[#allocation2 + $0x160] sm:$0xff]  ;;  %v167_v38 = vld [vmem:[#allocation2 + $0x168] sm:$0xff]  ;;  %v168_v39 = vld [vmem:[#allocation2 + $0x170] sm:$0xff]  ;;  %s5561_s4 = smov [#allocation5]   ;;  %vm4464_vm11 = vcmask 25600  }
  0x1b   :  { %5220 = vmatpush3.bf16.msra.mxu1 %v5217_v23  ;;  %v5237_v37 = vpack.c.bf16 %v166_v36, %v165_v35  ;;  %v5241_v40 = vpack.c.bf16 %v168_v39, %v167_v38  ;;  %v50_v41 = vld [vmem:[#allocation2 + $0x40] sm:$0xff]  ;;  %v169_v42 = vld [vmem:[#allocation2 + $0x178] sm:$0xff]  ;;  %v137_v55 = vld [vmem:[#allocation2 + $0x48] sm:$0xff]  ;;  %s4472_s5 = sshll.u32 %s5561_s4, 4  ;;  %s4473_s5 = int_to_ptr.vmem [resolvable:$true] %s4472_s5 }
  0x1c   :  { %5212 = vmatpush3.bf16.msra.mxu0 %v5209_v8  ;;  %5222 = vmatprep.subr.bf16.mxu1 %v5221_v25  ;;  %v170_v43 = vld [vmem:[#allocation2 + $0x180] sm:$0xff]  ;;  %v49_v44 = vld [vmem:[#allocation2 + $0x38] sm:$0xff]  ;;  %v138_v60 = vld [vmem:[#allocation2 + $0x50] sm:$0xff]  ;;  %s5521_s6 = scalar_lea.vmem %s4473_s5, 32  ;;  %p5526_p9 = scmp.lt.s32.totalorder %s4473_s5, %s4473_s5 }
  0x1d   :  { %5214 = vmatprep.subr.bf16.mxu0 %v5213_v11  ;;  %v5245_v45 = vpack.c.bf16 %v170_v43, %v169_v42  ;;  %v139_v0 = vld [vmem:[#allocation2 + $0x58] sm:$0xff]  ;;  %v140_v4 = vld [vmem:[#allocation2 + $0x60] sm:$0xff]  ;;  %v141_v5 = vld [vmem:[#allocation2 + $0x68] sm:$0xff]  ;;  %p5522_p8 = scmp.ne.s32.totalorder %s4473_s5, %s5521_s6  ;;  %p5527_p10 = scmp.lt.s32.totalorder %s5521_s6, %s5521_s6 }
  0x1e   :  { %v142_v8 = vld [vmem:[#allocation2 + $0x70] sm:$0xff]  ;;  %v143_v9 = vld [vmem:[#allocation2 + $0x78] sm:$0xff]  ;;  %v174_v21 = vld [vmem:[#allocation2 + $0x1a0] sm:$0xff] }
  0x1f   :  { %5224 = vmatpush3.bf16.msra.mxu1 %v5221_v25  ;;  %v173_v22 = vld [vmem:[#allocation2 + $0x198] sm:$0xff]  ;;  %v176_v27 = vld [vmem:[#allocation2 + $0x1b0] sm:$0xff]  ;;  %v178_v33 = vld [vmem:[#allocation2 + $0x1c0] sm:$0xff]  ;;  %p5528_p11 = por %p5527_p10, %p5526_p9 }
  0x20   :  { %5216 = vmatpush3.bf16.msra.mxu0 %v5213_v11  ;;  %5226 = vmatprep.subr.bf16.mxu1 %v5225_v28 }
  0x21   :  { %4796 = vmatprep.subr.msk.mxu0 %vm58_vm0, %v48_v12  ;;  %p5529_p12 = pnand %p5528_p11, %p5522_p8 }
  0x23   :  { %5228 = vmatpush3.bf16.msra.mxu1 %v5225_v28  ;;  %v175_v28 = vld [vmem:[#allocation2 + $0x1a8] sm:$0xff] }
  0x24   :  { %4797 = vmatpush3.msk.msra.mxu0 %vm58_vm0, %v48_v12  ;;  %5230 = vmatprep.subr.bf16.mxu1 %v5229_v31  ;;  %v144_v12 = vld [vmem:[#allocation2 + $0x80] sm:$0xff] }
  0x25   :  { %4845 = vmatprep.subr.mxu0 %v5551_v13 }
  0x27   :  { %5232 = vmatpush3.bf16.msra.mxu1 %v5229_v31 }
  0x28   :  { %5234 = vmatprep.subr.bf16.mxu1 %v5233_v34 }
  0x2b   :  { %5236 = vmatpush3.bf16.msra.mxu1 %v5233_v34  ;;  %v177_v34 = vld [vmem:[#allocation2 + $0x1b8] sm:$0xff] }
  0x2c   :  { %5238 = vmatprep.subr.bf16.mxu1 %v5237_v37 }
  0x2f   :  { %5240 = vmatpush3.bf16.msra.mxu1 %v5237_v37 }
  0x30   :  { %5242 = vmatprep.subr.bf16.mxu1 %v5241_v40 }
  0x33   :  { %5244 = vmatpush3.bf16.msra.mxu1 %v5241_v40 }
  0x34   :  { %5246 = vmatprep.subr.bf16.mxu1 %v5245_v45 }
  0x37   :  { %5248 = vmatpush3.bf16.msra.mxu1 %v5245_v45 }
  0x38   :  { %4885 = vmatprep.subr.mxu1 %v5551_v13 }
  0x94   :  { %v32_v16 = vpop.permute.xlu0 %31 }
  0x95   :  { %vm36_vm2 = vcmp.eq.s32.totalorder %v29_v15, %v32_v16  ;;  %v171_v16 = vld [vmem:[#allocation2 + $0x188] sm:$0xff] }
  0x96   :  { %v4481_v17 = vsel %vm36_vm2, 1.0, %v5551_v13 }
  0x97   :  { %4798 = vmatprep.mubr.msk.f32.mxu0 %vm51_vm1, %v4481_v17 }
  0x98   :  { %v35_v18 = vpop.permute.xlu0 %34 }
  0x99   :  { %vm37_vm3 = vcmp.eq.s32.totalorder %v29_v15, %v35_v18  ;;  %v172_v15 = vld [vmem:[#allocation2 + $0x190] sm:$0xff] }
  0x9a   :  { %v4482_v19 = vsel %vm37_vm3, 1.0, %v5551_v13 }
  0x9b   :  { %4799 = vmatmul.mubr.msk.f32.vlgmr.msra.gmra.mrb[0].mxu0 %vm51_vm1, %v4482_v19 }
  0x9c   :  { %4847 = vmatprep.mubr.msk.f32.mxu0 %vm5555_vm7, %v5551_v13 }
 0x16e   :  { %v4800_v46 = vpop.f32.mrb[0].mxu0 }
 0x16f   :  { %v5599_v47 = vadd.f32 %v4800_v46, %v50_v41  ;;  %v128_v48 = vpop.f32.mrb[1].mxu0 }
 0x170   :  { %v5601_v49 = vadd.f32 %v128_v48, %v49_v44 }
 0x171   :  { %206 = vrot.lane.b32.xlu1 %v5599_v47, %s5552_s0 }
 0x172   :  { %210 = vrot.lane.b32.xlu0 %v5601_v49, %s5553_s1 }
 0x175   :  { %212 = vrot.lane.b32.xlu1 %v5599_v47, %s5553_s1 }
 0x176   :  { %216 = vrot.lane.b32.xlu0 %v5601_v49, %s5554_s27 }
 0x179   :  { %204 = vrot.lane.b32.xlu1 %v5601_v49, %s5552_s0 }
 0x17d   :  { %218 = vrot.lane.b32.xlu1 %v5599_v47, %s5554_s27 }
 0x1e3   :  { %v207_v50 = vpop.permute.xlu1 %206 }
 0x1e4   :  { %v211_v51 = vpop.permute.xlu0 %210  ;;  %v224_v58 = vsel %vm222_vm4, %v5599_v47, %v207_v50 }
 0x1e7   :  { %v213_v52 = vpop.permute.xlu1 %212 }
 0x1e8   :  { %v217_v56 = vpop.permute.xlu0 %216  ;;  %v227_v61 = vsel %vm225_vm6, %v224_v58, %v213_v52 }
 0x1eb   :  { %v205_v53 = vpop.permute.xlu1 %204 }
 0x1ec   :  { %v223_v54 = vsel %vm222_vm4, %v5601_v49, %v205_v53 }
 0x1ed   :  { %v226_v57 = vsel %vm225_vm6, %v223_v54, %v211_v51 }
 0x1ee   :  { %v229_v59 = vsel %vm228_vm5, %v226_v57, %v217_v56 }
 0x1ef   :  { %v219_v62 = vpop.permute.xlu1 %218  ;;  %v231_v63 = vmul.f32 %v229_v59, %v137_v55  ;;  %v233_v3 = vmul.f32 %v229_v59, %v139_v0  ;;  %v235_v7 = vmul.f32 %v229_v59, %v141_v5  ;;  %v237_v11 = vmul.f32 %v229_v59, %v143_v9 }
 0x1f0   :  { %v230_v1 = vsel %vm228_vm5, %v227_v61, %v219_v62 }
 0x1f1   :  { %4833 = vmatprep.mubr.f32.mxu1 %v231_v63  ;;  %v232_v2 = vmul.f32 %v230_v1, %v138_v60  ;;  %v234_v6 = vmul.f32 %v230_v1, %v140_v4  ;;  %v236_v10 = vmul.f32 %v230_v1, %v142_v8  ;;  %v238_v14 = vmul.f32 %v230_v1, %v144_v12 }
 0x1f3   :  { %4834 = vmatmul.mubr.f32.vlgmr.msra.gmra.mrb[0].mxu1 %v232_v2 }
 0x1f4   :  { %4836 = vmatprep.mubr.f32.mxu1 %v233_v3 }
 0x1f7   :  { %4837 = vmatmul.mubr.f32.gmra.mrb[2].mxu1 %v234_v6 }
 0x1f8   :  { %4839 = vmatprep.mubr.f32.mxu1 %v235_v7 }
 0x1fb   :  { %4840 = vmatmul.mubr.f32.gmra.mrb[4].mxu1 %v236_v10 }
 0x1fc   :  { %4842 = vmatprep.mubr.f32.mxu1 %v237_v11 }
 0x1ff   :  { %4843 = vmatmul.mubr.f32.gmra.mrb[6].mxu1 %v238_v14 }
 0x200   :  { %4887 = vmatprep.mubr.msk.f32.mxu1 %vm5555_vm7, %v5551_v13 }
 0x2c6   :  { %v4835_v17 = vpop.f32.mrb[0].mxu1 }
 0x2c7   :  { %v5628_v18 = vadd.f32 %v4835_v17, %v172_v15  ;;  %v305_v19 = vpop.f32.mrb[1].mxu1 }
 0x2c8   :  { %v5630_v20 = vadd.f32 %v305_v19, %v171_v16 }
 0x2c9   :  { %423 = vrot.lane.b32.xlu1 %v5628_v18, %s5556_s28 }
 0x2ca   :  { %v4838_v23 = vpop.f32.mrb[2].mxu1  ;;  %345 = vrot.lane.b32.xlu0 %v5630_v20, %s5556_s28 }
 0x2cb   :  { %v5636_v24 = vadd.f32 %v4838_v23, %v174_v21  ;;  %v315_v25 = vpop.f32.mrb[3].mxu1 }
 0x2cc   :  { %v5638_v26 = vadd.f32 %v315_v25, %v173_v22 }
 0x2cd   :  { %577 = vrot.lane.b32.xlu1 %v5636_v24, %s5556_s28 }
 0x2ce   :  { %v4841_v29 = vpop.f32.mrb[4].mxu1  ;;  %500 = vrot.lane.b32.xlu0 %v5638_v26, %s5556_s28 }
 0x2cf   :  { %v5644_v30 = vadd.f32 %v4841_v29, %v176_v27  ;;  %v325_v31 = vpop.f32.mrb[5].mxu1 }
 0x2d0   :  { %v5646_v32 = vadd.f32 %v325_v31, %v175_v28 }
 0x2d1   :  { %731 = vrot.lane.b32.xlu1 %v5644_v30, %s5556_s28 }
 0x2d2   :  { %v4844_v35 = vpop.f32.mrb[6].mxu1  ;;  %654 = vrot.lane.b32.xlu0 %v5646_v32, %s5556_s28 }
 0x2d3   :  { %v5652_v36 = vadd.f32 %v4844_v35, %v178_v33  ;;  %v335_v37 = vpop.f32.mrb[7].mxu1 }
 0x2d4   :  { %v5654_v38 = vadd.f32 %v335_v37, %v177_v34 }
 0x2d5   :  { %885 = vrot.lane.b32.xlu1 %v5652_v36, %s5556_s28 }
 0x2d6   :  { %808 = vrot.lane.b32.xlu0 %v5654_v38, %s5556_s28 }
 0x33b   :  { %v424_v40 = vpop.permute.xlu1 %423 }
 0x33c   :  { %v346_v39 = vpop.permute.xlu0 %345 }
 0x33d   :  { %4846 = vmatpush3.xpose.msk.msra.mxu0 %vm347_vm8, %v346_v39 }
 0x33e   :  { %4850 = vmatprep.subr.mxu0 %v5551_v13 }
 0x33f   :  { %v578_v42 = vpop.permute.xlu1 %577 }
 0x340   :  { %4848 = vmatmul.mubr.msk.f32.vlgmr.msra.gmra.mrb[2].mxu0 %vm347_vm8, %v5630_v20  ;;  %v501_v41 = vpop.permute.xlu0 %500 }
 0x341   :  { %4851 = vmatpush3.xpose.msk.msra.mxu0 %vm347_vm8, %v424_v40  ;;  %4852 = vmatprep.mubr.msk.f32.mxu0 %vm5555_vm7, %v5551_v13 }
 0x342   :  { %4855 = vmatprep.subr.mxu0 %v5551_v13 }
 0x343   :  { %v732_v44 = vpop.permute.xlu1 %731 }
 0x344   :  { %4853 = vmatmul.mubr.msk.f32.vlgmr.msra.gmra.mrb[4].mxu0 %vm347_vm8, %v5628_v18  ;;  %v655_v43 = vpop.permute.xlu0 %654 }
 0x345   :  { %4856 = vmatpush3.xpose.msk.msra.mxu0 %vm347_vm8, %v501_v41  ;;  %4857 = vmatprep.mubr.msk.f32.mxu0 %vm5555_vm7, %v5551_v13 }
 0x346   :  { %4860 = vmatprep.subr.mxu0 %v5551_v13 }
 0x347   :  { %v886_v46 = vpop.permute.xlu1 %885 }
 0x348   :  { %4858 = vmatmul.mubr.msk.f32.vlgmr.msra.gmra.mrb[6].mxu0 %vm347_vm8, %v5638_v26  ;;  %v809_v45 = vpop.permute.xlu0 %808 }
 0x349   :  { %4861 = vmatpush3.xpose.msk.msra.mxu0 %vm347_vm8, %v578_v42  ;;  %4862 = vmatprep.mubr.msk.f32.mxu0 %vm5555_vm7, %v5551_v13 }
 0x34a   :  { %4865 = vmatprep.subr.mxu0 %v5551_v13 }
 0x34c   :  { %4863 = vmatmul.mubr.msk.f32.vlgmr.msra.gmra.mrb[8].mxu0 %vm347_vm8, %v5636_v24 }
 0x34d   :  { %4866 = vmatpush3.xpose.msk.msra.mxu0 %vm347_vm8, %v655_v43  ;;  %4867 = vmatprep.mubr.msk.f32.mxu0 %vm5555_vm7, %v5551_v13 }
 0x34e   :  { %4870 = vmatprep.subr.mxu0 %v5551_v13 }
 0x350   :  { %4868 = vmatmul.mubr.msk.f32.vlgmr.msra.gmra.mrb[10].mxu0 %vm347_vm8, %v5646_v32 }
 0x351   :  { %4871 = vmatpush3.xpose.msk.msra.mxu0 %vm347_vm8, %v732_v44  ;;  %4872 = vmatprep.mubr.msk.f32.mxu0 %vm5555_vm7, %v5551_v13 }
 0x352   :  { %4875 = vmatprep.subr.mxu0 %v5551_v13 }
 0x354   :  { %4873 = vmatmul.mubr.msk.f32.vlgmr.msra.gmra.mrb[12].mxu0 %vm347_vm8, %v5644_v30 }
 0x355   :  { %4876 = vmatpush3.xpose.msk.msra.mxu0 %vm347_vm8, %v809_v45  ;;  %4877 = vmatprep.mubr.msk.f32.mxu0 %vm5555_vm7, %v5551_v13 }
 0x356   :  { %4880 = vmatprep.subr.mxu0 %v5551_v13 }
 0x358   :  { %4878 = vmatmul.mubr.msk.f32.vlgmr.msra.gmra.mrb[14].mxu0 %vm347_vm8, %v5654_v38 }
 0x359   :  { %4881 = vmatpush3.xpose.msk.msra.mxu0 %vm347_vm8, %v886_v46  ;;  %4882 = vmatprep.mubr.msk.f32.mxu0 %vm5555_vm7, %v5551_v13 }
 0x35a   :  { %4890 = vmatprep.subr.mxu0 %v5551_v13 }
 0x35c   :  { %4883 = vmatmul.mubr.msk.f32.vlgmr.msra.gmra.mrb[16].mxu0 %vm347_vm8, %v5652_v36 }
 0x35d   :  { %4892 = vmatprep.mubr.msk.f32.mxu0 %vm5555_vm7, %v5551_v13 }
 0x413   :  { %v418_v48 = vpop.f32.mrb[2].mxu0 }
 0x414   :  { %v4849_v50 = vpop.f32.mrb[3].mxu0  ;;  %v961_v51 = vsel %vm347_vm8, %v418_v48, -inf }
 0x415   :  { %962 = vmax.xlane.f32.xlu0 %v961_v51 }
 0x417   :  { %v495_v52 = vpop.f32.mrb[4].mxu0 }
 0x418   :  { %v4854_v53 = vpop.f32.mrb[5].mxu0  ;;  %v964_v54 = vsel %vm347_vm8, %v495_v52, -inf }
 0x419   :  { %965 = vmax.xlane.f32.xlu1 %v964_v54 }
 0x41b   :  { %v572_v55 = vpop.f32.mrb[6].mxu0 }
 0x41c   :  { %v4859_v56 = vpop.f32.mrb[7].mxu0  ;;  %v967_v57 = vsel %vm347_vm8, %v572_v55, -inf }
 0x41d   :  { %968 = vmax.xlane.f32.xlu0 %v967_v57 }
 0x41f   :  { %v649_v58 = vpop.f32.mrb[8].mxu0 }
 0x420   :  { %v4864_v59 = vpop.f32.mrb[9].mxu0  ;;  %v970_v60 = vsel %vm347_vm8, %v649_v58, -inf }
 0x421   :  { %971 = vmax.xlane.f32.xlu0 %v970_v60 }
 0x423   :  { %v726_v61 = vpop.f32.mrb[10].mxu0 }
 0x424   :  { %v4869_v62 = vpop.f32.mrb[11].mxu0  ;;  %v973_v63 = vsel %vm347_vm8, %v726_v61, -inf }
 0x425   :  { %974 = vmax.xlane.f32.xlu1 %v973_v63 }
 0x427   :  { %v803_v0 = vpop.f32.mrb[12].mxu0 }
 0x428   :  { %v4874_v1 = vpop.f32.mrb[13].mxu0  ;;  %v976_v2 = vsel %vm347_vm8, %v803_v0, -inf }
 0x429   :  { %977 = vmax.xlane.f32.xlu0 %v976_v2 }
 0x42b   :  { %v880_v3 = vpop.f32.mrb[14].mxu0 }
 0x42c   :  { %v4879_v4 = vpop.f32.mrb[15].mxu0  ;;  %v979_v5 = vsel %vm347_vm8, %v880_v3, -inf }
 0x42d   :  { %980 = vmax.xlane.f32.xlu1 %v979_v5 }
 0x42f   :  { %v957_v6 = vpop.f32.mrb[16].mxu0 }
 0x430   :  { %v4884_v7 = vpop.f32.mrb[17].mxu0  ;;  %v982_v8 = vsel %vm347_vm8, %v957_v6, -inf }
 0x431   :  { %983 = vmax.xlane.f32.xlu0 %v982_v8 }
 0x43e   :  { %1049 = vrot.lane.b32.xlu1 %v5630_v20, %s5557_s29 }
 0x442   :  { %1201 = vrot.lane.b32.xlu1 %v5638_v26, %s5557_s29 }
 0x446   :  { %1277 = vrot.lane.b32.xlu1 %v5636_v24, %s5557_s29 }
 0x447   :  { %1125 = vrot.lane.b32.xlu0 %v5628_v18, %s5557_s29 }
 0x44a   :  { %1429 = vrot.lane.b32.xlu1 %v5644_v30, %s5557_s29 }
 0x44b   :  { %1353 = vrot.lane.b32.xlu0 %v5646_v32, %s5557_s29 }
 0x4a2   :  { %v963_v9 = vpop.xlane.xlu0 %962 }
 0x4a3   :  { %v985_v10 = vsub.f32 %v418_v48, %v963_v9 }
 0x4a5   :  { %v993_v11 = vmul.f32 1.442695, %v985_v10 }
 0x4a6   :  { %v966_v12 = vpop.xlane.xlu1 %965 }
 0x4a7   :  { %5402 = vpow2.f32 %v993_v11  ;;  %v986_v14 = vsub.f32 %v495_v52, %v966_v12 }
 0x4a9   :  { %v995_v15 = vmul.f32 1.442695, %v986_v14 }
 0x4aa   :  { %v969_v16 = vpop.xlane.xlu0 %968 }
 0x4ab   :  { %5404 = vpow2.f32 %v995_v15  ;;  %v987_v17 = vsub.f32 %v572_v55, %v969_v16 }
 0x4ad   :  { %v997_v19 = vmul.f32 1.442695, %v987_v17 }
 0x4ae   :  { %v972_v20 = vpop.xlane.xlu0 %971 }
 0x4af   :  { %5406 = vpow2.f32 %v997_v19  ;;  %v988_v18 = vsub.f32 %v649_v58, %v972_v20 }
 0x4b1   :  { %v5403_v21 = vpop.eup %5402  ;;  %v999_v22 = vmul.f32 1.442695, %v988_v18 }
 0x4b2   :  { %v975_v23 = vpop.xlane.xlu1 %974  ;;  %v1009_v24 = vsel %vm347_vm8, %v5403_v21, 0.0 }
 0x4b3   :  { %5408 = vpow2.f32 %v999_v22  ;;  %v989_v25 = vsub.f32 %v726_v61, %v975_v23  ;;  %1010 = vadd.xlane.f32.xlu1 %v1009_v24  ;;  %v180_v22 = vld [vmem:[#allocation2 + $0x1d0] sm:$0xff]  ;;  %v181_v24 = vld [vmem:[#allocation2 + $0x1d8] sm:$0xff] }
 0x4b5   :  { %v5405_v26 = vpop.eup %5404  ;;  %v1001_v27 = vmul.f32 1.442695, %v989_v25  ;;  %v182_v25 = vld [vmem:[#allocation2 + $0x1e0] sm:$0xff] }
 0x4b6   :  { %v978_v28 = vpop.xlane.xlu0 %977  ;;  %v1012_v29 = vsel %vm347_vm8, %v5405_v26, 0.0 }
 0x4b7   :  { %5410 = vpow2.f32 %v1001_v27  ;;  %v990_v30 = vsub.f32 %v803_v0, %v978_v28  ;;  %1013 = vadd.xlane.f32.xlu0 %v1012_v29 }
 0x4b9   :  { %v5730_v31 = vpop.eup %5406  ;;  %v1003_v32 = vmul.f32 1.442695, %v990_v30 }
 0x4ba   :  { %v981_v33 = vpop.xlane.xlu1 %980  ;;  %v1015_v34 = vsel %vm347_vm8, %v5730_v31, 0.0 }
 0x4bb   :  { %5412 = vpow2.f32 %v1003_v32  ;;  %v991_v35 = vsub.f32 %v880_v3, %v981_v33  ;;  %1016 = vadd.xlane.f32.xlu1 %v1015_v34 }
 0x4bd   :  { %v5734_v37 = vpop.eup %5408  ;;  %v1005_v39 = vmul.f32 1.442695, %v991_v35 }
 0x4be   :  { %v1050_v40 = vpop.permute.xlu1 %1049  ;;  %v984_v41 = vpop.xlane.xlu0 %983  ;;  %v1018_v42 = vsel %vm347_vm8, %v5734_v37, 0.0 }
 0x4bf   :  { %5414 = vpow2.f32 %v1005_v39  ;;  %v992_v43 = vsub.f32 %v957_v6, %v984_v41  ;;  %4886 = vmatpush3.msra.mxu1 %v1050_v40  ;;  %1019 = vadd.xlane.f32.xlu0 %v1018_v42 }
 0x4c0   :  { %4895 = vmatprep.subr.mxu1 %v5551_v13 }
 0x4c1   :  { %v5411_v44 = vpop.eup %5410  ;;  %v1007_v45 = vmul.f32 1.442695, %v992_v43 }
 0x4c2   :  { %v1126_v46 = vpop.permute.xlu0 %1125  ;;  %v1021_v48 = vsel %vm347_vm8, %v5411_v44, 0.0  ;;  %v1202_v56 = vpop.permute.xlu1 %1201 }
 0x4c3   :  { %5416 = vpow2.f32 %v1007_v45  ;;  %1022 = vadd.xlane.f32.xlu1 %v1021_v48  ;;  %4891 = vmatpush3.msra.mxu0 %v1126_v46 }
 0x4c4   :  { %4900 = vmatprep.subr.mxu0 %v5551_v13 }
 0x4c5   :  { %v5413_v50 = vpop.eup %5412 }
 0x4c6   :  { %v1024_v51 = vsel %vm347_vm8, %v5413_v50, 0.0  ;;  %v1278_v57 = vpop.permute.xlu1 %1277  ;;  %v1354_v59 = vpop.permute.xlu0 %1353 }
 0x4c7   :  { %1025 = vadd.xlane.f32.xlu0 %v1024_v51  ;;  %v145_v51 = vld [vmem:[#allocation2 + $0x88] sm:$0xff] }
 0x4c9   :  { %v5742_v52 = vpop.eup %5414 }
 0x4ca   :  { %v1027_v53 = vsel %vm347_vm8, %v5742_v52, 0.0  ;;  %v1430_v58 = vpop.permute.xlu1 %1429 }
 0x4cb   :  { %1028 = vadd.xlane.f32.xlu1 %v1027_v53 }
 0x4cd   :  { %v5746_v54 = vpop.eup %5416 }
 0x4ce   :  { %v1030_v55 = vsel %vm347_vm8, %v5746_v54, 0.0 }
 0x4cf   :  { %1031 = vadd.xlane.f32.xlu0 %v1030_v55 }
 0x4dc   :  { %1581 = vrot.lane.b32.xlu1 %v5652_v36, %s5557_s29 }
 0x4e5   :  { %1505 = vrot.lane.b32.xlu0 %v5654_v38, %s5557_s29 }
 0x540   :  { %v1011_v60 = vpop.xlane.xlu1 %1010 }
 0x541   :  { %5418 = vrcp.f32 %v1011_v60 }
 0x544   :  { %v1014_v61 = vpop.xlane.xlu0 %1013 }
 0x545   :  { %5420 = vrcp.f32 %v1014_v61 }
 0x548   :  { %v1017_v62 = vpop.xlane.xlu1 %1016 }
 0x549   :  { %5422 = vrcp.f32 %v1017_v62 }
 0x54b   :  { %v5419_v63 = vpop.eup %5418 }
 0x54c   :  { %v1041_v0 = vmul.f32 %v5419_v63, %v5403_v21  ;;  %v1020_v1 = vpop.xlane.xlu0 %1019  ;;  %v179_v21 = vld [vmem:[#allocation2 + $0x1c8] sm:$0xff] }
 0x54d   :  { %5424 = vrcp.f32 %v1020_v1  ;;  %v5249_v23 = vpack.c.bf16 %v180_v22, %v179_v21 }
 0x54e   :  { %4888 = vmatmul.mubr.msk.f32.vlgmr.msra.gmra.mrb[8].mxu1 %vm347_vm8, %v1041_v0 }
 0x54f   :  { %v5421_v36 = vpop.eup %5420  ;;  %4896 = vmatpush3.msra.mxu1 %v1202_v56  ;;  %4897 = vmatprep.mubr.msk.f32.mxu1 %vm5555_vm7, %v5551_v13 }
 0x550   :  { %v1023_v38 = vpop.xlane.xlu1 %1022  ;;  %v1042_v2 = vmul.f32 %v5421_v36, %v5405_v26  ;;  %4905 = vmatprep.subr.mxu1 %v5551_v13  ;;  %v5253_v26 = vpack.c.bf16 %v182_v25, %v181_v24  ;;  %v150_v25 = vld [vmem:[#allocation2 + $0xb0] sm:$0xff] }
 0x551   :  { %5426 = vrcp.f32 %v1023_v38  ;;  %v147_v38 = vld [vmem:[#allocation2 + $0x98] sm:$0xff] }
 0x552   :  { %4893 = vmatmul.mubr.msk.f32.vlgmr.msra.gmra.mrb[18].mxu0 %vm347_vm8, %v1042_v2 }
 0x553   :  { %v5423_v3 = vpop.eup %5422  ;;  %4901 = vmatpush3.msra.mxu0 %v1278_v57  ;;  %4902 = vmatprep.mubr.msk.f32.mxu0 %vm5555_vm7, %v5551_v13 }
 0x554   :  { %v1026_v4 = vpop.xlane.xlu0 %1025  ;;  %v1043_v5 = vmul.f32 %v5423_v3, %v5730_v31  ;;  %4910 = vmatprep.subr.mxu0 %v5551_v13 }
 0x555   :  { %5428 = vrcp.f32 %v1026_v4 }
 0x556   :  { %4898 = vmatmul.mubr.msk.f32.vlgmr.msra.gmra.mrb[10].mxu1 %vm347_vm8, %v1043_v5 }
 0x557   :  { %v5425_v6 = vpop.eup %5424  ;;  %4906 = vmatpush3.msra.mxu1 %v1354_v59  ;;  %4907 = vmatprep.mubr.msk.f32.mxu1 %vm5555_vm7, %v5551_v13 }
 0x558   :  { %v1029_v7 = vpop.xlane.xlu1 %1028  ;;  %v1044_v8 = vmul.f32 %v5425_v6, %v5734_v37  ;;  %4915 = vmatprep.subr.mxu1 %v5551_v13 }
 0x559   :  { %5430 = vrcp.f32 %v1029_v7 }
 0x55a   :  { %4903 = vmatmul.mubr.msk.f32.vlgmr.msra.gmra.mrb[20].mxu0 %vm347_vm8, %v1044_v8  ;;  %v148_v8 = vld [vmem:[#allocation2 + $0xa0] sm:$0xff] }
 0x55b   :  { %v5427_v9 = vpop.eup %5426  ;;  %4911 = vmatpush3.msra.mxu0 %v1430_v58  ;;  %4912 = vmatprep.mubr.msk.f32.mxu0 %vm5555_vm7, %v5551_v13  ;;  %v146_v58 = vld [vmem:[#allocation2 + $0x90] sm:$0xff] }
 0x55c   :  { %v1032_v10 = vpop.xlane.xlu0 %1031  ;;  %v1045_v11 = vmul.f32 %v5427_v9, %v5411_v44  ;;  %4920 = vmatprep.subr.mxu0 %v5551_v13  ;;  %v1582_v16 = vpop.permute.xlu1 %1581 }
 0x55d   :  { %5432 = vrcp.f32 %v1032_v10 }
 0x55e   :  { %4908 = vmatmul.mubr.msk.f32.vlgmr.msra.gmra.mrb[12].mxu1 %vm347_vm8, %v1045_v11 }
 0x55f   :  { %v5429_v12 = vpop.eup %5428  ;;  %4917 = vmatprep.mubr.msk.f32.mxu1 %vm5555_vm7, %v5551_v13 }
 0x560   :  { %v1506_v14 = vpop.permute.xlu0 %1505  ;;  %v1046_v15 = vmul.f32 %v5429_v12, %v5413_v50 }
 0x561   :  { %4916 = vmatpush3.msra.mxu1 %v1506_v14 }
 0x562   :  { %4913 = vmatmul.mubr.msk.f32.vlgmr.msra.gmra.mrb[22].mxu0 %vm347_vm8, %v1046_v15  ;;  %5250 = vmatprep.subr.bf16.mxu1 %v5249_v23 }
 0x563   :  { %v5431_v17 = vpop.eup %5430  ;;  %4921 = vmatpush3.msra.mxu0 %v1582_v16  ;;  %4922 = vmatprep.mubr.msk.f32.mxu0 %vm5555_vm7, %v5551_v13 }
 0x564   :  { %v1047_v19 = vmul.f32 %v5431_v17, %v5742_v52 }
 0x566   :  { %4918 = vmatmul.mubr.msk.f32.vlgmr.msra.gmra.mrb[14].mxu1 %vm347_vm8, %v1047_v19  ;;  %v149_v19 = vld [vmem:[#allocation2 + $0xa8] sm:$0xff] }
 0x567   :  { %v5433_v20 = vpop.eup %5432  ;;  %5252 = vmatpush3.bf16.msra.mxu1 %v5249_v23 }
 0x568   :  { %v1048_v18 = vmul.f32 %v5433_v20, %v5746_v54  ;;  %5254 = vmatprep.subr.bf16.mxu1 %v5253_v26 }
 0x56a   :  { %4923 = vmatmul.mubr.msk.f32.vlgmr.msra.gmra.mrb[24].mxu0 %vm347_vm8, %v1048_v18 }
 0x56b   :  { %5256 = vmatpush3.bf16.msra.mxu1 %v5253_v26 }
 0x621   :  { %v1121_v27 = vpop.f32.mrb[8].mxu1 }
 0x622   :  { %v4889_v28 = vpop.f32.mrb[9].mxu1  ;;  %1665 = vrot.lane.b32.xlu0 %v1121_v27, %s5549_s20 }
 0x625   :  { %v1197_v29 = vpop.f32.mrb[18].mxu0 }
 0x626   :  { %1689 = vrot.lane.b32.xlu0 %v1121_v27, %s5558_s30  ;;  %1667 = vrot.lane.b32.xlu1 %v1197_v29, %s5549_s20  ;;  %v4894_v30 = vpop.f32.mrb[19].mxu0 }
 0x629   :  { %v1273_v31 = vpop.f32.mrb[10].mxu1 }
 0x62a   :  { %v4899_v32 = vpop.f32.mrb[11].mxu1  ;;  %1713 = vrot.lane.b32.xlu0 %v1121_v27, %s5559_s3  ;;  %1691 = vrot.lane.b32.xlu1 %v1197_v29, %s5558_s30 }
 0x62d   :  { %v1349_v33 = vpop.f32.mrb[20].mxu0 }
 0x62e   :  { %1669 = vrot.lane.b32.xlu0 %v1273_v31, %s5549_s20  ;;  %1715 = vrot.lane.b32.xlu1 %v1197_v29, %s5559_s3  ;;  %v4904_v34 = vpop.f32.mrb[21].mxu0 }
 0x62f   :  { %v151_v34 = vld [vmem:[#allocation2 + $0xb8] sm:$0xff] }
 0x631   :  { %v5789_v35 = vpop.f32.mrb[12].mxu1 }
 0x632   :  { %1693 = vrot.lane.b32.xlu0 %v1273_v31, %s5558_s30  ;;  %v4909_v37 = vpop.f32.mrb[13].mxu1  ;;  %1671 = vrot.lane.b32.xlu1 %v1349_v33, %s5549_s20 }
 0x635   :  { %v5793_v39 = vpop.f32.mrb[22].mxu0 }
 0x636   :  { %1717 = vrot.lane.b32.xlu0 %v1273_v31, %s5559_s3  ;;  %1695 = vrot.lane.b32.xlu1 %v1349_v33, %s5558_s30  ;;  %v4914_v40 = vpop.f32.mrb[23].mxu0 }
 0x639   :  { %v5797_v41 = vpop.f32.mrb[14].mxu1 }
 0x63a   :  { %1673 = vrot.lane.b32.xlu0 %v5789_v35, %s5549_s20  ;;  %1719 = vrot.lane.b32.xlu1 %v1349_v33, %s5559_s3  ;;  %v4919_v42 = vpop.f32.mrb[15].mxu1 }
 0x63d   :  { %v5802_v43 = vpop.f32.mrb[24].mxu0 }
 0x63e   :  { %1697 = vrot.lane.b32.xlu0 %v5789_v35, %s5558_s30  ;;  %1675 = vrot.lane.b32.xlu1 %v5793_v39, %s5549_s20  ;;  %v4924_v44 = vpop.f32.mrb[25].mxu0 }
 0x642   :  { %1721 = vrot.lane.b32.xlu0 %v5789_v35, %s5559_s3  ;;  %1699 = vrot.lane.b32.xlu1 %v5793_v39, %s5558_s30 }
 0x646   :  { %1723 = vrot.lane.b32.xlu1 %v5793_v39, %s5559_s3  ;;  %1677 = vrot.lane.b32.xlu0 %v5797_v41, %s5549_s20 }
 0x64a   :  { %1679 = vrot.lane.b32.xlu1 %v5802_v43, %s5549_s20  ;;  %1701 = vrot.lane.b32.xlu0 %v5797_v41, %s5558_s30 }
 0x64e   :  { %1703 = vrot.lane.b32.xlu1 %v5802_v43, %s5558_s30  ;;  %1725 = vrot.lane.b32.xlu0 %v5797_v41, %s5559_s3 }
 0x652   :  { %1727 = vrot.lane.b32.xlu1 %v5802_v43, %s5559_s3 }
 0x694   :  { %v1666_v45 = vpop.permute.xlu0 %1665 }
 0x695   :  { %v1737_v50 = vsel %vm347_vm8, %v1121_v27, %v1666_v45  ;;  %v152_v45 = vld [vmem:[#allocation2 + $0xc0] sm:$0xff] }
 0x698   :  { %v1668_v46 = vpop.permute.xlu1 %1667  ;;  %v1690_v48 = vpop.permute.xlu0 %1689 }
 0x699   :  { %v1746_v52 = vsel %vm1745_vm9, %v1737_v50, %v1690_v48  ;;  %v1738_v57 = vsel %vm347_vm8, %v1197_v29, %v1668_v46 }
 0x69c   :  { %v1692_v53 = vpop.permute.xlu1 %1691  ;;  %v1714_v54 = vpop.permute.xlu0 %1713 }
 0x69d   :  { %v1755_v55 = vsel %vm1754_vm10, %v1746_v52, %v1714_v54  ;;  %v1747_v59 = vsel %vm1745_vm9, %v1738_v57, %v1692_v53 }
 0x69e   :  { %v1763_v56 = vmul.f32 %v1755_v55, %v145_v51  ;;  %v5862_v51 = vld [vmem:[#allocation2 + $0xc8] sm:$0xff] }
 0x69f   :  { %4961 = vmatprep.mubr.msk.f32.mxu0 %vm225_vm6, %v5862_v51 }
 0x6a0   :  { %v1716_v60 = vpop.permute.xlu1 %1715  ;;  %4933 = vmatprep.mubr.msk.f32.mxu1 %vm222_vm4, %v1763_v56  ;;  %v1670_v61 = vpop.permute.xlu0 %1669 }
 0x6a1   :  { %v1756_v62 = vsel %vm1754_vm10, %v1747_v59, %v1716_v60  ;;  %v1739_v36 = vsel %vm347_vm8, %v1273_v31, %v1670_v61 }
 0x6a2   :  { %v1764_v63 = vmul.f32 %v1756_v62, %v146_v58 }
 0x6a4   :  { %v1672_v0 = vpop.permute.xlu1 %1671  ;;  %4934 = vmatmul.mubr.msk.f32.vlgmr.msra.gmra.mrb[16].mxu1 %vm222_vm4, %v1764_v63  ;;  %v1694_v1 = vpop.permute.xlu0 %1693  ;;  %v154_v63 = vld [vmem:[#allocation2 + $0xd0] sm:$0xff] }
 0x6a5   :  { %v1748_v2 = vsel %vm1745_vm9, %v1739_v36, %v1694_v1  ;;  %v1740_v7 = vsel %vm347_vm8, %v1349_v33, %v1672_v0  ;;  %v4518_v0 = vld [vmem:[#allocation2 + $0x1e8] ss:$0 sm:$0xff] }
 0x6a8   :  { %v1696_v3 = vpop.permute.xlu1 %1695  ;;  %v1718_v4 = vpop.permute.xlu0 %1717 }
 0x6a9   :  { %v1757_v5 = vsel %vm1754_vm10, %v1748_v2, %v1718_v4  ;;  %v1749_v9 = vsel %vm1745_vm9, %v1740_v7, %v1696_v3 }
 0x6aa   :  { %v1765_v6 = vmul.f32 %v1757_v5, %v147_v38 }
 0x6ac   :  { %v1720_v10 = vpop.permute.xlu1 %1719  ;;  %4936 = vmatprep.mubr.msk.f32.mxu1 %vm222_vm4, %v1765_v6  ;;  %v1674_v11 = vpop.permute.xlu0 %1673 }
 0x6ad   :  { %v1758_v12 = vsel %vm1754_vm10, %v1749_v9, %v1720_v10  ;;  %v1741_v17 = vsel %vm347_vm8, %v5789_v35, %v1674_v11 }
 0x6ae   :  { %v1766_v14 = vmul.f32 %v1758_v12, %v148_v8 }
 0x6b0   :  { %v1676_v15 = vpop.permute.xlu1 %1675  ;;  %4937 = vmatmul.mubr.msk.f32.gmra.mrb[18].mxu1 %vm222_vm4, %v1766_v14  ;;  %v1698_v16 = vpop.permute.xlu0 %1697 }
 0x6b1   :  { %v1750_v20 = vsel %vm1745_vm9, %v1741_v17, %v1698_v16  ;;  %v1742_v24 = vsel %vm347_vm8, %v5793_v39, %v1676_v15  ;;  %v187_v17 = vld [vmem:[#allocation2 + $0x208] sm:$0xff] }
 0x6b4   :  { %v1700_v18 = vpop.permute.xlu1 %1699  ;;  %v1722_v21 = vpop.permute.xlu0 %1721 }
 0x6b5   :  { %v1759_v22 = vsel %vm1754_vm10, %v1750_v20, %v1722_v21  ;;  %v1751_v26 = vsel %vm1745_vm9, %v1742_v24, %v1700_v18  ;;  %v188_v20 = vld [vmem:[#allocation2 + $0x210] sm:$0xff]  ;;  %v189_v18 = vld [vmem:[#allocation2 + $0x218] sm:$0xff] }
 0x6b6   :  { %v1767_v23 = vmul.f32 %v1759_v22, %v149_v19  ;;  %v5277_v21 = vpack.c.bf16 %v189_v18, %v188_v20  ;;  %v191_v22 = vld [vmem:[#allocation2 + $0x228] sm:$0xff]  ;;  %v193_v24 = vld [vmem:[#allocation2 + $0x238] sm:$0xff]  ;;  %v2242_v18 = vld [vmem:[#allocation2 + $0x2a0] sm:$0xff] }
 0x6b8   :  { %v1724_v27 = vpop.permute.xlu1 %1723  ;;  %4939 = vmatprep.mubr.msk.f32.mxu1 %vm222_vm4, %v1767_v23  ;;  %v1678_v28 = vpop.permute.xlu0 %1677  ;;  %v192_v23 = vld [vmem:[#allocation2 + $0x230] sm:$0xff] }
 0x6b9   :  { %v1760_v29 = vsel %vm1754_vm10, %v1751_v26, %v1724_v27  ;;  %v1743_v33 = vsel %vm347_vm8, %v5797_v41, %v1678_v28  ;;  %v194_v26 = vld [vmem:[#allocation2 + $0x240] sm:$0xff]  ;;  %v195_v28 = vld [vmem:[#allocation2 + $0x248] sm:$0xff] }
 0x6ba   :  { %v1768_v30 = vmul.f32 %v1760_v29, %v150_v25  ;;  %v5281_v25 = vpack.c.bf16 %v192_v23, %v191_v22  ;;  %v5285_v27 = vpack.c.bf16 %v194_v26, %v193_v24  ;;  %v196_v29 = vld [vmem:[#allocation2 + $0x250] sm:$0xff]  ;;  %v2245_v24 = vld [vmem:[#allocation2 + $0x2b8] sm:$0xff]  ;;  %v2246_v26 = vld [vmem:[#allocation2 + $0x2c0] sm:$0xff] }
 0x6bb   :  { %v2244_v23 = vld [vmem:[#allocation2 + $0x2b0] sm:$0xff] }
 0x6bc   :  { %v1680_v31 = vpop.permute.xlu1 %1679  ;;  %4940 = vmatmul.mubr.msk.f32.gmra.mrb[20].mxu1 %vm222_vm4, %v1768_v30  ;;  %v1702_v32 = vpop.permute.xlu0 %1701  ;;  %v5289_v30 = vpack.c.bf16 %v196_v29, %v195_v28 }
 0x6bd   :  { %v1752_v35 = vsel %vm1745_vm9, %v1743_v33, %v1702_v32  ;;  %v1744_v44 = vsel %vm347_vm8, %v5802_v43, %v1680_v31 }
 0x6c0   :  { %v1704_v37 = vpop.permute.xlu1 %1703  ;;  %v1726_v39 = vpop.permute.xlu0 %1725 }
 0x6c1   :  { %v1761_v40 = vsel %vm1754_vm10, %v1752_v35, %v1726_v39  ;;  %v1753_v46 = vsel %vm1745_vm9, %v1744_v44, %v1704_v37  ;;  %v4522_v44 = vld [vmem:[#allocation2 + $0x1f8] ss:$0 sm:$0xff] }
 0x6c2   :  { %v1769_v42 = vmul.f32 %v1761_v40, %v151_v34  ;;  %v4521_v40 = vld [vmem:[#allocation2 + $0x1f0] ss:$0 sm:$0xff] }
 0x6c4   :  { %v1728_v48 = vpop.permute.xlu1 %1727  ;;  %4942 = vmatprep.mubr.msk.f32.mxu1 %vm222_vm4, %v1769_v42 }
 0x6c5   :  { %v1762_v50 = vsel %vm1754_vm10, %v1753_v46, %v1728_v48 }
 0x6c6   :  { %v1770_v41 = vmul.f32 %v1762_v50, %v152_v45 }
 0x6c8   :  { %4943 = vmatmul.mubr.msk.f32.gmra.mrb[22].mxu1 %vm222_vm4, %v1770_v41 }
 0x777   :  { %v4935_v52 = vpop.f32.mrb[16].mxu1 }
 0x778   :  { %v1861_v53 = vpop.f32.mrb[17].mxu1 }
 0x779   :  { %v5257_v54 = vpack.c.bf16 %v4935_v52, %v1861_v53  ;;  %v197_v53 = vld [vmem:[#allocation2 + $0x258] sm:$0xff] }
 0x77b   :  { %5258 = vmatprep.subr.bf16.mxu0 %v5257_v54 }
 0x77c   :  { %5260 = vmatpush3.bf16.msra.mxu0 %v5257_v54  ;;  %v198_v54 = vld [vmem:[#allocation2 + $0x260] sm:$0xff] }
 0x783   :  { %v4938_v43 = vpop.f32.mrb[18].mxu1 }
 0x784   :  { %v1871_v55 = vpop.f32.mrb[19].mxu1 }
 0x785   :  { %v5261_v56 = vpack.c.bf16 %v4938_v43, %v1871_v55  ;;  %v5293_v43 = vpack.c.bf16 %v198_v54, %v197_v53  ;;  %v4523_v55 = vld [vmem:[#allocation2 + $0x220] ss:$0 sm:$0xff]  ;;  %v2252_v54 = vld [vmem:[#allocation2 + $0x2f0] sm:$0xff] }
 0x787   :  { %5262 = vmatprep.subr.bf16.mxu0 %v5261_v56 }
 0x788   :  { %5264 = vmatpush3.bf16.msra.mxu0 %v5261_v56 }
 0x78f   :  { %v4941_v57 = vpop.f32.mrb[20].mxu1 }
 0x790   :  { %v1881_v58 = vpop.f32.mrb[21].mxu1 }
 0x791   :  { %v5265_v59 = vpack.c.bf16 %v4941_v57, %v1881_v58 }
 0x793   :  { %5266 = vmatprep.subr.bf16.mxu0 %v5265_v59 }
 0x794   :  { %5268 = vmatpush3.bf16.msra.mxu0 %v5265_v59 }
 0x79b   :  { %v4944_v60 = vpop.f32.mrb[22].mxu1 }
 0x79c   :  { %v1891_v61 = vpop.f32.mrb[23].mxu1 }
 0x79d   :  { %v5269_v62 = vpack.c.bf16 %v4944_v60, %v1891_v61 }
 0x79f   :  { %5270 = vmatprep.subr.bf16.mxu0 %v5269_v62 }
 0x7a0   :  { %5272 = vmatpush3.bf16.msra.mxu0 %v5269_v62  ;;  %v4526_v62 = vld [vmem:[#allocation2 + $0x268] ss:$0 sm:$0xff] }
 0x7a1   :  { %5282 = vmatprep.subr.bf16.mxu0 %v5281_v25 }
 0x7a3   :  { %4962 = vmatmul.mubr.msk.f32.vlgmr.msra.gmra.mrb[26].mxu0 %vm225_vm6, %v154_v63 }
 0x7a4   :  { %5284 = vmatpush3.bf16.msra.mxu0 %v5281_v25  ;;  %v5309_v25 = vpack.c.bf16 %v2245_v24, %v2244_v23 }
 0x7a5   :  { %5286 = vmatprep.subr.bf16.mxu0 %v5285_v27 }
 0x7a8   :  { %5288 = vmatpush3.bf16.msra.mxu0 %v5285_v27  ;;  %v2247_v27 = vld [vmem:[#allocation2 + $0x2c8] sm:$0xff] }
 0x7a9   :  { %5290 = vmatprep.subr.bf16.mxu0 %v5289_v30  ;;  %v5313_v28 = vpack.c.bf16 %v2247_v27, %v2246_v26  ;;  %v2257_v26 = vld [vmem:[#allocation2 + $0x318] sm:$0xff]  ;;  %v2256_v27 = vld [vmem:[#allocation2 + $0x310] sm:$0xff] }
 0x7ac   :  { %5292 = vmatpush3.bf16.msra.mxu0 %v5289_v30 }
 0x7ad   :  { %5294 = vmatprep.subr.bf16.mxu0 %v5293_v43 }
 0x7b0   :  { %5296 = vmatpush3.bf16.msra.mxu0 %v5293_v43  ;;  %v2253_v43 = vld [vmem:[#allocation2 + $0x2f8] sm:$0xff] }
 0x7b1   :  { %5038 = vmatprep.subr.mxu0 %v5551_v13 }
 0x876   :  { %v4963_v1 = vpop.f32.mrb[26].mxu0 }
 0x877   :  { %v1982_v36 = vadd.f32 %v4963_v1, %v4518_v0  ;;  %v1976_v38 = vpop.f32.mrb[27].mxu0 }
 0x878   :  { %v1977_v2 = vadd.f32 %v4518_v0, %v1976_v38 }
 0x879   :  { %v1986_v3 = vadd.f32 %v1982_v36, %v5599_v47 }
 0x87a   :  { %v1985_v4 = vadd.f32 %v1977_v2, %v5601_v49  ;;  %v186_v49 = vld [vmem:[#allocation2 + $0x200] sm:$0xff] }
 0x87b   :  { %v1990_v5 = vsel %vm222_vm4, %v1986_v3, 0.0  ;;  %v5273_v19 = vpack.c.bf16 %v187_v17, %v186_v49  ;;  %v2240_v49 = vld [vmem:[#allocation2 + $0x290] sm:$0xff] }
 0x87c   :  { %1991 = vadd.xlane.f32.xlu1 %v1990_v5  ;;  %v1987_v6 = vsel %vm222_vm4, %v1985_v4, 0.0 }
 0x87d   :  { %1988 = vadd.xlane.f32.xlu0 %v1987_v6  ;;  %5274 = vmatprep.subr.bf16.mxu1 %v5273_v19 }
 0x87e   :  { %5276 = vmatpush3.bf16.msra.mxu1 %v5273_v19  ;;  %v2241_v19 = vld [vmem:[#allocation2 + $0x298] sm:$0xff] }
 0x87f   :  { %5278 = vmatprep.subr.bf16.mxu1 %v5277_v21  ;;  %v5301_v20 = vpack.c.bf16 %v2241_v19, %v2240_v49  ;;  %v5488_v49 = vld [vmem:[#allocation2 + $0x78] sm:$0xff]  ;;  %v5489_v19 = vld [vmem:[#allocation2 + $0x80] sm:$0xff] }
 0x882   :  { %5280 = vmatpush3.bf16.msra.mxu1 %v5277_v21  ;;  %v2243_v21 = vld [vmem:[#allocation2 + $0x2a8] sm:$0xff] }
 0x883   :  { %v5305_v22 = vpack.c.bf16 %v2243_v21, %v2242_v18  ;;  %v2255_v18 = vld [vmem:[#allocation2 + $0x308] sm:$0xff]  ;;  %v2254_v21 = vld [vmem:[#allocation2 + $0x300] sm:$0xff] }
 0x909   :  { %v1992_v7 = vpop.xlane.xlu1 %1991 }
 0x90a   :  { %v1995_v8 = vmul.f32 0.03125, %v1992_v7  ;;  %v1989_v9 = vpop.xlane.xlu0 %1988 }
 0x90b   :  { %v1994_v10 = vmul.f32 0.03125, %v1989_v9 }
 0x90c   :  { %v1997_v11 = vsub.f32 %v1986_v3, %v1995_v8 }
 0x90d   :  { %v1996_v12 = vsub.f32 %v1985_v4, %v1994_v10 }
 0x90e   :  { %v1999_v16 = vmul.f32 %v1997_v11, %v1997_v11 }
 0x90f   :  { %v1998_v14 = vmul.f32 %v1996_v12, %v1996_v12 }
 0x910   :  { %v2003_v47 = vsel %vm222_vm4, %v1999_v16, 0.0  ;;  %v2238_v16 = vld [vmem:[#allocation2 + $0x280] sm:$0xff] }
 0x911   :  { %v2000_v15 = vsel %vm222_vm4, %v1998_v14, 0.0 }
 0x912   :  { %2001 = vadd.xlane.f32.xlu0 %v2000_v15 }
 0x916   :  { %2004 = vadd.xlane.f32.xlu0 %v2003_v47  ;;  %v2239_v47 = vld [vmem:[#allocation2 + $0x288] sm:$0xff] }
 0x917   :  { %v5297_v17 = vpack.c.bf16 %v2239_v47, %v2238_v16  ;;  %v5487_v16 = vld [vmem:[#allocation2 + $0x70] sm:$0xff] }
 0x919   :  { %5298 = vmatprep.subr.bf16.mxu1 %v5297_v17 }
 0x99f   :  { %v2002_v31 = vpop.xlane.xlu0 %2001 }
 0x9a0   :  { %v2006_v32 = vmul.f32 0.03125, %v2002_v31 }
 0x9a2   :  { %v2008_v33 = vadd.f32 1e-05, %v2006_v32 }
 0x9a3   :  { %v2005_v34 = vpop.xlane.xlu0 %2004 }
 0x9a4   :  { %5434 = vrsqrt.f32 %v2008_v33  ;;  %v2007_v35 = vmul.f32 0.03125, %v2005_v34 }
 0x9a6   :  { %v2009_v37 = vadd.f32 1e-05, %v2007_v35  ;;  %v2248_v35 = vld [vmem:[#allocation2 + $0x2d0] sm:$0xff] }
 0x9a8   :  { %5436 = vrsqrt.f32 %v2009_v37  ;;  %v2249_v37 = vld [vmem:[#allocation2 + $0x2d8] sm:$0xff] }
 0x9ae   :  { %v5435_v39 = vpop.eup %5434 }
 0x9af   :  { %v2012_v42 = vmul.f32 %v5435_v39, %v1996_v12  ;;  %v5317_v39 = vpack.c.bf16 %v2249_v37, %v2248_v35 }
 0x9b1   :  { %v2018_v45 = vmul.f32 %v4521_v40, %v2012_v42  ;;  %v2251_v42 = vld [vmem:[#allocation2 + $0x2e8] sm:$0xff] }
 0x9b2   :  { %v5437_v46 = vpop.eup %5436 }
 0x9b3   :  { %v2013_v48 = vmul.f32 %v5437_v46, %v1997_v11  ;;  %v2024_v50 = vadd.f32 %v4522_v44, %v2018_v45  ;;  %v4529_v46 = vld [vmem:[#allocation2 + $0x270] ss:$0 sm:$0xff] }
 0x9b5   :  { %v2019_v41 = vmul.f32 %v4521_v40, %v2013_v48  ;;  %4972 = vmatprep.mubr.msk.f32.mxu1 %vm222_vm4, %v2024_v50  ;;  %v2250_v40 = vld [vmem:[#allocation2 + $0x2e0] sm:$0xff] }
 0x9b7   :  { %v2025_v52 = vadd.f32 %v4522_v44, %v2019_v41  ;;  %v5321_v44 = vpack.c.bf16 %v2251_v42, %v2250_v40  ;;  %v2261_v40 = vld [vmem:[#allocation2 + $0x338] sm:$0xff]  ;;  %v2260_v42 = vld [vmem:[#allocation2 + $0x330] sm:$0xff] }
 0x9b9   :  { %4973 = vmatmul.mubr.msk.f32.vlgmr.msra.gmra.mrb[24].mxu1 %vm222_vm4, %v2025_v52 }
 0x9ba   :  { %5300 = vmatpush3.bf16.msra.mxu1 %v5297_v17 }
 0x9bb   :  { %5302 = vmatprep.subr.bf16.mxu1 %v5301_v20 }
 0x9be   :  { %5304 = vmatpush3.bf16.msra.mxu1 %v5301_v20 }
 0x9bf   :  { %5306 = vmatprep.subr.bf16.mxu1 %v5305_v22 }
 0x9c2   :  { %5308 = vmatpush3.bf16.msra.mxu1 %v5305_v22 }
 0x9c3   :  { %5310 = vmatprep.subr.bf16.mxu1 %v5309_v25 }
 0x9c6   :  { %5312 = vmatpush3.bf16.msra.mxu1 %v5309_v25 }
 0x9c7   :  { %5314 = vmatprep.subr.bf16.mxu1 %v5313_v28 }
 0x9ca   :  { %5316 = vmatpush3.bf16.msra.mxu1 %v5313_v28 }
 0x9cb   :  { %5318 = vmatprep.subr.bf16.mxu1 %v5317_v39 }
 0x9ce   :  { %5320 = vmatpush3.bf16.msra.mxu1 %v5317_v39 }
 0x9cf   :  { %5322 = vmatprep.subr.bf16.mxu1 %v5321_v44 }
 0x9d2   :  { %5324 = vmatpush3.bf16.msra.mxu1 %v5321_v44 }
 0xa8c   :  { %v4974_v56 = vpop.f32.mrb[24].mxu1 }
 0xa8d   :  { %v2108_v57 = vadd.f32 %v4974_v56, %v4523_v55  ;;  %v2102_v58 = vpop.f32.mrb[25].mxu1 }
 0xa8e   :  { %v2103_v59 = vadd.f32 %v4523_v55, %v2102_v58  ;;  %v5325_v55 = vpack.c.bf16 %v2253_v43, %v2252_v54 }
 0xa8f   :  { %v2112_v61 = vmax.f32 %v2108_v57, 0.0 }
 0xa90   :  { %v2111_v60 = vmax.f32 %v2103_v59, 0.0  ;;  %5326 = vmatprep.subr.bf16.mxu1 %v5325_v55 }
 0xa91   :  { %5328 = vmatpush3.bf16.msra.mxu1 %v5325_v55 }
 0xa92   :  { %4991 = vmatprep.mubr.msk.f32.mxu0 %vm225_vm6, %v2111_v60  ;;  %5083 = vmatprep.subr.mxu1 %v5551_v13 }
 0xa93   :  { %4992 = vmatmul.mubr.msk.f32.vlgmr.msra.gmra.mrb[28].mxu0 %vm225_vm6, %v2112_v61 }
 0xa94   :  { %5040 = vmatprep.mubr.msk.f32.mxu0 %vm5555_vm7, %v5551_v13 }
 0xb66   :  { %v4993_v63 = vpop.f32.mrb[28].mxu0 }
 0xb67   :  { %v2195_v0 = vadd.f32 %v4993_v63, %v4526_v62  ;;  %v2189_v1 = vpop.f32.mrb[29].mxu0 }
 0xb68   :  { %v2190_v36 = vadd.f32 %v4526_v62, %v2189_v1 }
 0xb69   :  { %v2199_v38 = vadd.f32 %v2195_v0, %v2025_v52  ;;  %v4530_v52 = vld [vmem:[#allocation2 + $0x278] ss:$0 sm:$0xff] }
 0xb6a   :  { %v2198_v2 = vadd.f32 %v2190_v36, %v2024_v50 }
 0xb6b   :  { %v2203_v3 = vsel %vm222_vm4, %v2199_v38, 0.0 }
 0xb6c   :  { %2204 = vadd.xlane.f32.xlu0 %v2203_v3  ;;  %v2200_v4 = vsel %vm222_vm4, %v2198_v2, 0.0 }
 0xb6d   :  { %2201 = vadd.xlane.f32.xlu1 %v2200_v4 }
 0xbf9   :  { %v2205_v5 = vpop.xlane.xlu0 %2204 }
 0xbfa   :  { %v2207_v6 = vmul.f32 0.03125, %v2205_v5  ;;  %v2202_v7 = vpop.xlane.xlu1 %2201 }
 0xbfb   :  { %v2206_v8 = vmul.f32 0.03125, %v2202_v7  ;;  %v5483_v7 = vld [vmem:[#allocation2 + $0x50] sm:$0xff] }
 0xbfc   :  { %v2209_v9 = vsub.f32 %v2199_v38, %v2207_v6 }
 0xbfd   :  { %v2208_v10 = vsub.f32 %v2198_v2, %v2206_v8  ;;  %v5482_v2 = vld [vmem:[#allocation2 + $0x48] sm:$0xff] }
 0xbfe   :  { %v2211_v11 = vmul.f32 %v2209_v9, %v2209_v9 }
 0xbff   :  { %v2210_v12 = vmul.f32 %v2208_v10, %v2208_v10 }
 0xc00   :  { %v2215_v14 = vsel %vm222_vm4, %v2211_v11, 0.0  ;;  %v5485_v11 = vld [vmem:[#allocation2 + $0x60] sm:$0xff] }
 0xc01   :  { %2216 = vadd.xlane.f32.xlu0 %v2215_v14  ;;  %v2212_v15 = vsel %vm222_vm4, %v2210_v12, 0.0  ;;  %v5486_v14 = vld [vmem:[#allocation2 + $0x68] sm:$0xff] }
 0xc02   :  { %2213 = vadd.xlane.f32.xlu1 %v2212_v15 }
 0xc8e   :  { %v2217_v29 = vpop.xlane.xlu0 %2216 }
 0xc8f   :  { %v2219_v30 = vmul.f32 0.03125, %v2217_v29  ;;  %v2214_v31 = vpop.xlane.xlu1 %2213 }
 0xc90   :  { %v2218_v32 = vmul.f32 0.03125, %v2214_v31 }
 0xc91   :  { %v2221_v33 = vadd.f32 1e-05, %v2219_v30 }
 0xc92   :  { %v2220_v34 = vadd.f32 1e-05, %v2218_v32  ;;  %v2259_v32 = vld [vmem:[#allocation2 + $0x328] sm:$0xff] }
 0xc93   :  { %5438 = vrsqrt.f32 %v2221_v33  ;;  %v2258_v33 = vld [vmem:[#allocation2 + $0x320] sm:$0xff] }
 0xc94   :  { %5440 = vrsqrt.f32 %v2220_v34 }
 0xc9d   :  { %v5439_v45 = vpop.eup %5438 }
 0xc9e   :  { %v5441_v48 = vpop.eup %5440  ;;  %v2225_v50 = vmul.f32 %v5439_v45, %v2209_v9  ;;  %v5484_v9 = vld [vmem:[#allocation2 + $0x58] sm:$0xff] }
 0xc9f   :  { %v2224_v41 = vmul.f32 %v5441_v48, %v2208_v10 }
 0xca0   :  { %v2231_v53 = vmul.f32 %v4529_v46, %v2225_v50 }
 0xca1   :  { %v2230_v57 = vmul.f32 %v4529_v46, %v2224_v41 }
 0xca2   :  { %v5884_v56 = vadd.f32 %v4530_v52, %v2231_v53 }
 0xca3   :  { %v5890_v58 = vadd.f32 %v4530_v52, %v2230_v57 }
 0xca4   :  { %2289 = vrot.lane.b32.xlu0 %v5884_v56, %s5552_s0  ;;  %2295 = vrot.lane.b32.xlu1 %v5884_v56, %s5553_s1 }
 0xca8   :  { %2299 = vrot.lane.b32.xlu0 %v5890_v58, %s5554_s27  ;;  %2287 = vrot.lane.b32.xlu1 %v5890_v58, %s5552_s0 }
 0xcac   :  { %2293 = vrot.lane.b32.xlu1 %v5890_v58, %s5553_s1 }
 0xcb0   :  { %2301 = vrot.lane.b32.xlu1 %v5884_v56, %s5554_s27 }
 0xd16   :  { %v2296_v59 = vpop.permute.xlu1 %2295  ;;  %v2290_v60 = vpop.permute.xlu0 %2289 }
 0xd17   :  { %v2306_v0 = vsel %vm222_vm4, %v5884_v56, %v2290_v60 }
 0xd18   :  { %v2308_v4 = vsel %vm225_vm6, %v2306_v0, %v2296_v59 }
 0xd1a   :  { %v2288_v61 = vpop.permute.xlu1 %2287  ;;  %v2300_v1 = vpop.permute.xlu0 %2299 }
 0xd1b   :  { %v2305_v62 = vsel %vm222_vm4, %v5890_v58, %v2288_v61 }
 0xd1e   :  { %v2294_v63 = vpop.permute.xlu1 %2293 }
 0xd1f   :  { %v2307_v36 = vsel %vm225_vm6, %v2305_v62, %v2294_v63 }
 0xd20   :  { %v2309_v38 = vsel %vm228_vm5, %v2307_v36, %v2300_v1 }
 0xd21   :  { %v2311_v3 = vmul.f32 %v5482_v2, %v2309_v38  ;;  %v2313_v10 = vmul.f32 %v5484_v9, %v2309_v38  ;;  %v2315_v15 = vmul.f32 %v5486_v14, %v2309_v38  ;;  %v2317_v17 = vmul.f32 %v5488_v49, %v2309_v38 }
 0xd22   :  { %v2302_v5 = vpop.permute.xlu1 %2301 }
 0xd23   :  { %v2310_v6 = vsel %vm228_vm5, %v2308_v4, %v2302_v5  ;;  %5026 = vmatprep.mubr.f32.mxu1 %v2311_v3 }
 0xd24   :  { %v2312_v8 = vmul.f32 %v5483_v7, %v2310_v6  ;;  %v2314_v12 = vmul.f32 %v5485_v11, %v2310_v6  ;;  %v2316_v47 = vmul.f32 %v5487_v16, %v2310_v6  ;;  %v2318_v20 = vmul.f32 %v5489_v19, %v2310_v6 }
 0xd26   :  { %5027 = vmatmul.mubr.f32.vlgmr.msra.gmra.mrb[26].mxu1 %v2312_v8 }
 0xd27   :  { %5029 = vmatprep.mubr.f32.mxu1 %v2313_v10 }
 0xd2a   :  { %5030 = vmatmul.mubr.f32.gmra.mrb[28].mxu1 %v2314_v12 }
 0xd2b   :  { %5032 = vmatprep.mubr.f32.mxu1 %v2315_v15 }
 0xd2e   :  { %5033 = vmatmul.mubr.f32.gmra.mrb[30].mxu1 %v2316_v47 }
 0xd2f   :  { %5035 = vmatprep.mubr.f32.mxu1 %v2317_v17 }
 0xd32   :  { %5036 = vmatmul.mubr.f32.gmra.mrb[32].mxu1 %v2318_v20 }
 0xd33   :  { %5085 = vmatprep.mubr.msk.f32.mxu1 %vm5555_vm7, %v5551_v13 }
 0xdf9   :  { %v5028_v22 = vpop.f32.mrb[26].mxu1 }
 0xdfa   :  { %v5911_v23 = vadd.f32 %v5028_v22, %v2255_v18  ;;  %v2385_v24 = vpop.f32.mrb[27].mxu1 }
 0xdfb   :  { %v5913_v25 = vadd.f32 %v2385_v24, %v2254_v21 }
 0xdfc   :  { %2502 = vrot.lane.b32.xlu1 %v5911_v23, %s5556_s28 }
 0xdfd   :  { %v5031_v28 = vpop.f32.mrb[28].mxu1  ;;  %2425 = vrot.lane.b32.xlu0 %v5913_v25, %s5556_s28 }
 0xdfe   :  { %v5919_v29 = vadd.f32 %v5031_v28, %v2257_v26  ;;  %v2395_v30 = vpop.f32.mrb[29].mxu1 }
 0xdff   :  { %v5921_v31 = vadd.f32 %v2395_v30, %v2256_v27 }
 0xe00   :  { %2656 = vrot.lane.b32.xlu1 %v5919_v29, %s5556_s28 }
 0xe01   :  { %v5034_v34 = vpop.f32.mrb[30].mxu1  ;;  %2579 = vrot.lane.b32.xlu0 %v5921_v31, %s5556_s28 }
 0xe02   :  { %v5927_v35 = vadd.f32 %v5034_v34, %v2259_v32  ;;  %v2405_v37 = vpop.f32.mrb[31].mxu1 }
 0xe03   :  { %v5929_v39 = vadd.f32 %v2405_v37, %v2258_v33 }
 0xe04   :  { %2810 = vrot.lane.b32.xlu1 %v5927_v35, %s5556_s28 }
 0xe05   :  { %v5037_v44 = vpop.f32.mrb[32].mxu1  ;;  %2733 = vrot.lane.b32.xlu0 %v5929_v39, %s5556_s28 }
 0xe06   :  { %v5935_v45 = vadd.f32 %v5037_v44, %v2261_v40  ;;  %v2415_v46 = vpop.f32.mrb[33].mxu1 }
 0xe07   :  { %v5937_v48 = vadd.f32 %v2415_v46, %v2260_v42 }
 0xe08   :  { %2964 = vrot.lane.b32.xlu1 %v5935_v45, %s5556_s28 }
 0xe09   :  { %2887 = vrot.lane.b32.xlu0 %v5937_v48, %s5556_s28 }
 0xe6e   :  { %v2503_v41 = vpop.permute.xlu1 %2502 }
 0xe6f   :  { %v2426_v50 = vpop.permute.xlu0 %2425 }
 0xe70   :  { %5039 = vmatpush3.xpose.msk.msra.mxu0 %vm347_vm8, %v2426_v50 }
 0xe71   :  { %5043 = vmatprep.subr.mxu0 %v5551_v13 }
 0xe72   :  { %v2657_v53 = vpop.permute.xlu1 %2656 }
 0xe73   :  { %5041 = vmatmul.mubr.msk.f32.vlgmr.msra.gmra.mrb[30].mxu0 %vm347_vm8, %v5913_v25  ;;  %v2580_v52 = vpop.permute.xlu0 %2579 }
 0xe74   :  { %5044 = vmatpush3.xpose.msk.msra.mxu0 %vm347_vm8, %v2503_v41  ;;  %5045 = vmatprep.mubr.msk.f32.mxu0 %vm5555_vm7, %v5551_v13 }
 0xe75   :  { %5048 = vmatprep.subr.mxu0 %v5551_v13 }
 0xe76   :  { %v2811_v43 = vpop.permute.xlu1 %2810 }
 0xe77   :  { %5046 = vmatmul.mubr.msk.f32.vlgmr.msra.gmra.mrb[32].mxu0 %vm347_vm8, %v5911_v23  ;;  %v2734_v54 = vpop.permute.xlu0 %2733 }
 0xe78   :  { %5049 = vmatpush3.xpose.msk.msra.mxu0 %vm347_vm8, %v2580_v52  ;;  %5050 = vmatprep.mubr.msk.f32.mxu0 %vm5555_vm7, %v5551_v13 }
 0xe79   :  { %5053 = vmatprep.subr.mxu0 %v5551_v13 }
 0xe7a   :  { %v2965_v57 = vpop.permute.xlu1 %2964 }
 0xe7b   :  { %5051 = vmatmul.mubr.msk.f32.vlgmr.msra.gmra.mrb[34].mxu0 %vm347_vm8, %v5921_v31  ;;  %v2888_v55 = vpop.permute.xlu0 %2887 }
 0xe7c   :  { %5054 = vmatpush3.xpose.msk.msra.mxu0 %vm347_vm8, %v2657_v53  ;;  %5055 = vmatprep.mubr.msk.f32.mxu0 %vm5555_vm7, %v5551_v13 }
 0xe7d   :  { %5058 = vmatprep.subr.mxu0 %v5551_v13 }
 0xe7f   :  { %5056 = vmatmul.mubr.msk.f32.vlgmr.msra.gmra.mrb[36].mxu0 %vm347_vm8, %v5919_v29 }
 0xe80   :  { %5059 = vmatpush3.xpose.msk.msra.mxu0 %vm347_vm8, %v2734_v54  ;;  %5060 = vmatprep.mubr.msk.f32.mxu0 %vm5555_vm7, %v5551_v13 }
 0xe81   :  { %5063 = vmatprep.subr.mxu0 %v5551_v13 }
 0xe83   :  { %5061 = vmatmul.mubr.msk.f32.vlgmr.msra.gmra.mrb[38].mxu0 %vm347_vm8, %v5929_v39 }
 0xe84   :  { %5064 = vmatpush3.xpose.msk.msra.mxu0 %vm347_vm8, %v2811_v43  ;;  %5065 = vmatprep.mubr.msk.f32.mxu0 %vm5555_vm7, %v5551_v13 }
 0xe85   :  { %5068 = vmatprep.subr.mxu0 %v5551_v13 }
 0xe87   :  { %5066 = vmatmul.mubr.msk.f32.vlgmr.msra.gmra.mrb[40].mxu0 %vm347_vm8, %v5927_v35 }
 0xe88   :  { %5069 = vmatpush3.xpose.msk.msra.mxu0 %vm347_vm8, %v2888_v55  ;;  %5070 = vmatprep.mubr.msk.f32.mxu0 %vm5555_vm7, %v5551_v13 }
 0xe89   :  { %5073 = vmatprep.subr.mxu0 %v5551_v13 }
 0xe8b   :  { %5071 = vmatmul.mubr.msk.f32.vlgmr.msra.gmra.mrb[42].mxu0 %vm347_vm8, %v5937_v48 }
 0xe8c   :  { %5074 = vmatpush3.xpose.msk.msra.mxu0 %vm347_vm8, %v2965_v57  ;;  %5075 = vmatprep.mubr.msk.f32.mxu0 %vm5555_vm7, %v5551_v13 }
 0xe8d   :  { %5078 = vmatprep.subr.mxu0 %v5551_v13 }
 0xe8f   :  { %5076 = vmatmul.mubr.msk.f32.vlgmr.msra.gmra.mrb[44].mxu0 %vm347_vm8, %v5935_v45 }
 0xe90   :  { %5080 = vmatprep.mubr.msk.f32.mxu0 %vm5555_vm7, %v5551_v13 }
 0xf46   :  { %v2497_v59 = vpop.f32.mrb[30].mxu0 }
 0xf47   :  { %v5042_v60 = vpop.f32.mrb[31].mxu0  ;;  %v3040_v61 = vsel %vm347_vm8, %v2497_v59, -inf }
 0xf48   :  { %3041 = vmax.xlane.f32.xlu0 %v3040_v61 }
 0xf4a   :  { %v2574_v62 = vpop.f32.mrb[32].mxu0 }
 0xf4b   :  { %v5047_v63 = vpop.f32.mrb[33].mxu0  ;;  %v3043_v0 = vsel %vm347_vm8, %v2574_v62, -inf }
 0xf4c   :  { %3044 = vmax.xlane.f32.xlu1 %v3043_v0 }
 0xf4e   :  { %v2651_v1 = vpop.f32.mrb[34].mxu0 }
 0xf4f   :  { %v5052_v36 = vpop.f32.mrb[35].mxu0  ;;  %v3046_v38 = vsel %vm347_vm8, %v2651_v1, -inf }
 0xf50   :  { %3047 = vmax.xlane.f32.xlu0 %v3046_v38 }
 0xf52   :  { %v2728_v2 = vpop.f32.mrb[36].mxu0 }
 0xf53   :  { %v5057_v3 = vpop.f32.mrb[37].mxu0  ;;  %v3049_v4 = vsel %vm347_vm8, %v2728_v2, -inf }
 0xf54   :  { %3050 = vmax.xlane.f32.xlu0 %v3049_v4 }
 0xf56   :  { %v2805_v5 = vpop.f32.mrb[38].mxu0 }
 0xf57   :  { %v5062_v6 = vpop.f32.mrb[39].mxu0  ;;  %v3052_v7 = vsel %vm347_vm8, %v2805_v5, -inf }
 0xf58   :  { %3053 = vmax.xlane.f32.xlu1 %v3052_v7 }
 0xf5a   :  { %v2882_v8 = vpop.f32.mrb[40].mxu0 }
 0xf5b   :  { %v5067_v9 = vpop.f32.mrb[41].mxu0  ;;  %v3055_v10 = vsel %vm347_vm8, %v2882_v8, -inf }
 0xf5c   :  { %3056 = vmax.xlane.f32.xlu0 %v3055_v10 }
 0xf5e   :  { %v2959_v11 = vpop.f32.mrb[42].mxu0 }
 0xf5f   :  { %v5072_v12 = vpop.f32.mrb[43].mxu0  ;;  %v3058_v14 = vsel %vm347_vm8, %v2959_v11, -inf }
 0xf60   :  { %3059 = vmax.xlane.f32.xlu1 %v3058_v14 }
 0xf62   :  { %v3036_v15 = vpop.f32.mrb[44].mxu0 }
 0xf63   :  { %v5077_v16 = vpop.f32.mrb[45].mxu0  ;;  %v3061_v47 = vsel %vm347_vm8, %v3036_v15, -inf }
 0xf64   :  { %3062 = vmax.xlane.f32.xlu0 %v3061_v47 }
 0xf71   :  { %3128 = vrot.lane.b32.xlu1 %v5913_v25, %s5557_s29 }
 0xf75   :  { %3280 = vrot.lane.b32.xlu1 %v5921_v31, %s5557_s29 }
 0xf79   :  { %3356 = vrot.lane.b32.xlu1 %v5919_v29, %s5557_s29 }
 0xf7a   :  { %3204 = vrot.lane.b32.xlu0 %v5911_v23, %s5557_s29 }
 0xf7d   :  { %3508 = vrot.lane.b32.xlu1 %v5927_v35, %s5557_s29 }
 0xf7e   :  { %3432 = vrot.lane.b32.xlu0 %v5929_v39, %s5557_s29 }
 0xfd5   :  { %v3042_v49 = vpop.xlane.xlu0 %3041 }
 0xfd6   :  { %v3064_v17 = vsub.f32 %v2497_v59, %v3042_v49 }
 0xfd8   :  { %v3072_v19 = vmul.f32 1.442695, %v3064_v17 }
 0xfd9   :  { %v3045_v20 = vpop.xlane.xlu1 %3044 }
 0xfda   :  { %5442 = vpow2.f32 %v3072_v19  ;;  %v3065_v18 = vsub.f32 %v2574_v62, %v3045_v20 }
 0xfdc   :  { %v3074_v21 = vmul.f32 1.442695, %v3065_v18 }
 0xfdd   :  { %v3048_v22 = vpop.xlane.xlu0 %3047 }
 0xfde   :  { %5444 = vpow2.f32 %v3074_v21  ;;  %v3066_v24 = vsub.f32 %v2651_v1, %v3048_v22 }
 0xfe0   :  { %v3076_v25 = vmul.f32 1.442695, %v3066_v24 }
 0xfe1   :  { %v3051_v26 = vpop.xlane.xlu0 %3050 }
 0xfe2   :  { %5446 = vpow2.f32 %v3076_v25  ;;  %v3067_v23 = vsub.f32 %v2728_v2, %v3051_v26 }
 0xfe4   :  { %v5443_v27 = vpop.eup %5442  ;;  %v3078_v28 = vmul.f32 1.442695, %v3067_v23 }
 0xfe5   :  { %v3054_v29 = vpop.xlane.xlu1 %3053  ;;  %v3088_v30 = vsel %vm347_vm8, %v5443_v27, 0.0 }
 0xfe6   :  { %5448 = vpow2.f32 %v3078_v28  ;;  %v3068_v31 = vsub.f32 %v2805_v5, %v3054_v29  ;;  %3089 = vadd.xlane.f32.xlu1 %v3088_v30  ;;  %v2262_v28 = vld [vmem:[#allocation2 + $0x340] sm:$0xff]  ;;  %v2263_v29 = vld [vmem:[#allocation2 + $0x348] sm:$0xff] }
 0xfe7   :  { %v5329_v30 = vpack.c.bf16 %v2263_v29, %v2262_v28  ;;  %v5494_v29 = vld [vmem:[#allocation2 + $0xa8] sm:$0xff] }
 0xfe8   :  { %v5445_v32 = vpop.eup %5444  ;;  %v3080_v33 = vmul.f32 1.442695, %v3068_v31  ;;  %v2264_v31 = vld [vmem:[#allocation2 + $0x350] sm:$0xff] }
 0xfe9   :  { %v3057_v34 = vpop.xlane.xlu0 %3056  ;;  %v3091_v35 = vsel %vm347_vm8, %v5445_v32, 0.0 }
 0xfea   :  { %5450 = vpow2.f32 %v3080_v33  ;;  %v3069_v37 = vsub.f32 %v2882_v8, %v3057_v34  ;;  %3092 = vadd.xlane.f32.xlu0 %v3091_v35 }
 0xfec   :  { %v5447_v39 = vpop.eup %5446  ;;  %v3082_v40 = vmul.f32 1.442695, %v3069_v37 }
 0xfed   :  { %v3060_v42 = vpop.xlane.xlu1 %3059  ;;  %v3094_v44 = vsel %vm347_vm8, %v5447_v39, 0.0 }
 0xfee   :  { %5452 = vpow2.f32 %v3082_v40  ;;  %v3070_v46 = vsub.f32 %v2959_v11, %v3060_v42  ;;  %3095 = vadd.xlane.f32.xlu1 %v3094_v44 }
 0xff0   :  { %v6014_v50 = vpop.eup %5448  ;;  %v3084_v41 = vmul.f32 1.442695, %v3070_v46 }
 0xff1   :  { %v3129_v52 = vpop.permute.xlu1 %3128  ;;  %v3063_v53 = vpop.xlane.xlu0 %3062  ;;  %v3097_v54 = vsel %vm347_vm8, %v6014_v50, 0.0 }
 0xff2   :  { %5454 = vpow2.f32 %v3084_v41  ;;  %v3071_v43 = vsub.f32 %v3036_v15, %v3063_v53  ;;  %5079 = vmatpush3.msra.mxu0 %v3129_v52  ;;  %3098 = vadd.xlane.f32.xlu0 %v3097_v54 }
 0xff3   :  { %5088 = vmatprep.subr.mxu0 %v5551_v13 }
 0xff4   :  { %v5451_v55 = vpop.eup %5450  ;;  %v3086_v57 = vmul.f32 1.442695, %v3071_v43 }
 0xff5   :  { %v3205_v59 = vpop.permute.xlu0 %3204  ;;  %v3100_v60 = vsel %vm347_vm8, %v5451_v55, 0.0  ;;  %v3281_v38 = vpop.permute.xlu1 %3280 }
 0xff6   :  { %5456 = vpow2.f32 %v3086_v57  ;;  %3101 = vadd.xlane.f32.xlu1 %v3100_v60  ;;  %5084 = vmatpush3.msra.mxu1 %v3205_v59 }
 0xff7   :  { %5093 = vmatprep.subr.mxu1 %v5551_v13 }
 0xff8   :  { %v5453_v61 = vpop.eup %5452 }
 0xff9   :  { %v3103_v62 = vsel %vm347_vm8, %v5453_v61, 0.0  ;;  %v3357_v2 = vpop.permute.xlu1 %3356  ;;  %v3433_v4 = vpop.permute.xlu0 %3432 }
 0xffa   :  { %3104 = vadd.xlane.f32.xlu0 %v3103_v62 }
 0xffc   :  { %v6022_v63 = vpop.eup %5454 }
 0xffd   :  { %v3106_v0 = vsel %vm347_vm8, %v6022_v63, 0.0  ;;  %v3509_v3 = vpop.permute.xlu1 %3508 }
 0xffe   :  { %3107 = vadd.xlane.f32.xlu1 %v3106_v0 }
0x1000   :  { %v6026_v1 = vpop.eup %5456 }
0x1001   :  { %v3109_v36 = vsel %vm347_vm8, %v6026_v1, 0.0 }
0x1002   :  { %3110 = vadd.xlane.f32.xlu0 %v3109_v36  ;;  %v5490_v36 = vld [vmem:[#allocation2 + $0x88] sm:$0xff] }
0x100f   :  { %3660 = vrot.lane.b32.xlu1 %v5935_v45, %s5557_s29 }
0x1018   :  { %3584 = vrot.lane.b32.xlu0 %v5937_v48, %s5557_s29 }
0x1073   :  { %v3090_v5 = vpop.xlane.xlu1 %3089 }
0x1074   :  { %5458 = vrcp.f32 %v3090_v5 }
0x1077   :  { %v3093_v6 = vpop.xlane.xlu0 %3092 }
0x1078   :  { %5460 = vrcp.f32 %v3093_v6 }
0x107b   :  { %v3096_v7 = vpop.xlane.xlu1 %3095 }
0x107c   :  { %5462 = vrcp.f32 %v3096_v7  ;;  %v5491_v7 = vld [vmem:[#allocation2 + $0x90] sm:$0xff] }
0x107e   :  { %v5459_v8 = vpop.eup %5458 }
0x107f   :  { %v3120_v9 = vmul.f32 %v5459_v8, %v5443_v27  ;;  %v3099_v10 = vpop.xlane.xlu0 %3098 }
0x1080   :  { %5464 = vrcp.f32 %v3099_v10 }
0x1081   :  { %5081 = vmatmul.mubr.msk.f32.vlgmr.msra.gmra.mrb[46].mxu0 %vm347_vm8, %v3120_v9 }
0x1082   :  { %v5461_v45 = vpop.eup %5460  ;;  %5089 = vmatpush3.msra.mxu0 %v3281_v38  ;;  %5090 = vmatprep.mubr.msk.f32.mxu0 %vm5555_vm7, %v5551_v13 }
0x1083   :  { %v3121_v48 = vmul.f32 %v5461_v45, %v5445_v32  ;;  %v3102_v11 = vpop.xlane.xlu1 %3101  ;;  %5098 = vmatprep.subr.mxu0 %v5551_v13  ;;  %v2265_v32 = vld [vmem:[#allocation2 + $0x358] sm:$0xff] }
0x1084   :  { %5466 = vrcp.f32 %v3102_v11  ;;  %v5333_v33 = vpack.c.bf16 %v2265_v32, %v2264_v31 }
0x1085   :  { %5086 = vmatmul.mubr.msk.f32.vlgmr.msra.gmra.mrb[34].mxu1 %vm347_vm8, %v3121_v48 }
0x1086   :  { %v5463_v12 = vpop.eup %5462  ;;  %5094 = vmatpush3.msra.mxu1 %v3357_v2  ;;  %5095 = vmatprep.mubr.msk.f32.mxu1 %vm5555_vm7, %v5551_v13 }
0x1087   :  { %v3122_v14 = vmul.f32 %v5463_v12, %v5447_v39  ;;  %v3105_v15 = vpop.xlane.xlu0 %3104  ;;  %5103 = vmatprep.subr.mxu1 %v5551_v13 }
0x1088   :  { %5468 = vrcp.f32 %v3105_v15  ;;  %v5492_v15 = vld [vmem:[#allocation2 + $0x98] sm:$0xff] }
0x1089   :  { %5091 = vmatmul.mubr.msk.f32.vlgmr.msra.gmra.mrb[48].mxu0 %vm347_vm8, %v3122_v14 }
0x108a   :  { %v5465_v16 = vpop.eup %5464  ;;  %5099 = vmatpush3.msra.mxu0 %v3433_v4  ;;  %5100 = vmatprep.mubr.msk.f32.mxu0 %vm5555_vm7, %v5551_v13 }
0x108b   :  { %v3123_v47 = vmul.f32 %v5465_v16, %v6014_v50  ;;  %v3108_v49 = vpop.xlane.xlu1 %3107  ;;  %5108 = vmatprep.subr.mxu0 %v5551_v13 }
0x108c   :  { %5470 = vrcp.f32 %v3108_v49 }
0x108d   :  { %5096 = vmatmul.mubr.msk.f32.vlgmr.msra.gmra.mrb[36].mxu1 %vm347_vm8, %v3123_v47 }
0x108e   :  { %v5467_v17 = vpop.eup %5466  ;;  %5104 = vmatpush3.msra.mxu1 %v3509_v3  ;;  %5105 = vmatprep.mubr.msk.f32.mxu1 %vm5555_vm7, %v5551_v13 }
0x108f   :  { %v3124_v19 = vmul.f32 %v5467_v17, %v5451_v55  ;;  %v3111_v20 = vpop.xlane.xlu0 %3110  ;;  %5113 = vmatprep.subr.mxu1 %v5551_v13  ;;  %v3661_v24 = vpop.permute.xlu1 %3660 }
0x1090   :  { %5472 = vrcp.f32 %v3111_v20 }
0x1091   :  { %5101 = vmatmul.mubr.msk.f32.vlgmr.msra.gmra.mrb[50].mxu0 %vm347_vm8, %v3124_v19 }
0x1092   :  { %v5469_v18 = vpop.eup %5468  ;;  %5110 = vmatprep.mubr.msk.f32.mxu0 %vm5555_vm7, %v5551_v13 }
0x1093   :  { %v3125_v21 = vmul.f32 %v5469_v18, %v5453_v61  ;;  %v3585_v22 = vpop.permute.xlu0 %3584  ;;  %v5493_v18 = vld [vmem:[#allocation2 + $0xa0] sm:$0xff] }
0x1094   :  { %5109 = vmatpush3.msra.mxu0 %v3585_v22 }
0x1095   :  { %5106 = vmatmul.mubr.msk.f32.vlgmr.msra.gmra.mrb[38].mxu1 %vm347_vm8, %v3125_v21  ;;  %5330 = vmatprep.subr.bf16.mxu0 %v5329_v30 }
0x1096   :  { %v5471_v25 = vpop.eup %5470  ;;  %5114 = vmatpush3.msra.mxu1 %v3661_v24  ;;  %5115 = vmatprep.mubr.msk.f32.mxu1 %vm5555_vm7, %v5551_v13 }
0x1097   :  { %v3126_v26 = vmul.f32 %v5471_v25, %v6022_v63 }
0x1099   :  { %5111 = vmatmul.mubr.msk.f32.vlgmr.msra.gmra.mrb[52].mxu0 %vm347_vm8, %v3126_v26 }
0x109a   :  { %v5473_v23 = vpop.eup %5472  ;;  %5332 = vmatpush3.bf16.msra.mxu0 %v5329_v30 }
0x109b   :  { %v3127_v27 = vmul.f32 %v5473_v23, %v6026_v1  ;;  %5334 = vmatprep.subr.bf16.mxu0 %v5333_v33 }
0x109d   :  { %5116 = vmatmul.mubr.msk.f32.vlgmr.msra.gmra.mrb[40].mxu1 %vm347_vm8, %v3127_v27 }
0x109e   :  { %5154 = vmatprep.mubr.msk.f32.mxu1 %vm225_vm6, %v5862_v51  ;;  %5336 = vmatpush3.bf16.msra.mxu0 %v5333_v33 }
0x1154   :  { %v3200_v34 = vpop.f32.mrb[46].mxu0 }
0x1155   :  { %v5082_v35 = vpop.f32.mrb[47].mxu0  ;;  %3744 = vrot.lane.b32.xlu0 %v3200_v34, %s5549_s20 }
0x1158   :  { %v3276_v37 = vpop.f32.mrb[34].mxu1 }
0x1159   :  { %3768 = vrot.lane.b32.xlu0 %v3200_v34, %s5558_s30  ;;  %3746 = vrot.lane.b32.xlu1 %v3276_v37, %s5549_s20  ;;  %v5087_v51 = vpop.f32.mrb[35].mxu1 }
0x115c   :  { %v3352_v39 = vpop.f32.mrb[48].mxu0 }
0x115d   :  { %v5092_v40 = vpop.f32.mrb[49].mxu0  ;;  %3792 = vrot.lane.b32.xlu0 %v3200_v34, %s5559_s3  ;;  %3770 = vrot.lane.b32.xlu1 %v3276_v37, %s5558_s30 }
0x1160   :  { %v3428_v42 = vpop.f32.mrb[36].mxu1 }
0x1161   :  { %3748 = vrot.lane.b32.xlu0 %v3352_v39, %s5549_s20  ;;  %3794 = vrot.lane.b32.xlu1 %v3276_v37, %s5559_s3  ;;  %v5097_v44 = vpop.f32.mrb[37].mxu1 }
0x1164   :  { %v6070_v46 = vpop.f32.mrb[50].mxu0 }
0x1165   :  { %3772 = vrot.lane.b32.xlu0 %v3352_v39, %s5558_s30  ;;  %v5102_v50 = vpop.f32.mrb[51].mxu0  ;;  %3750 = vrot.lane.b32.xlu1 %v3428_v42, %s5549_s20 }
0x1168   :  { %v6074_v41 = vpop.f32.mrb[38].mxu1 }
0x1169   :  { %3796 = vrot.lane.b32.xlu0 %v3352_v39, %s5559_s3  ;;  %3774 = vrot.lane.b32.xlu1 %v3428_v42, %s5558_s30  ;;  %v5107_v52 = vpop.f32.mrb[39].mxu1 }
0x116a   :  { %v5496_v52 = vld [vmem:[#allocation2 + $0xb8] sm:$0xff] }
0x116c   :  { %v6078_v53 = vpop.f32.mrb[52].mxu0 }
0x116d   :  { %3752 = vrot.lane.b32.xlu0 %v6070_v46, %s5549_s20  ;;  %3798 = vrot.lane.b32.xlu1 %v3428_v42, %s5559_s3  ;;  %v5112_v54 = vpop.f32.mrb[53].mxu0 }
0x1170   :  { %v6083_v43 = vpop.f32.mrb[40].mxu1 }
0x1171   :  { %3776 = vrot.lane.b32.xlu0 %v6070_v46, %s5558_s30  ;;  %3754 = vrot.lane.b32.xlu1 %v6074_v41, %s5549_s20  ;;  %v5117_v55 = vpop.f32.mrb[41].mxu1 }
0x1175   :  { %3800 = vrot.lane.b32.xlu0 %v6070_v46, %s5559_s3  ;;  %3778 = vrot.lane.b32.xlu1 %v6074_v41, %s5558_s30 }
0x1179   :  { %3802 = vrot.lane.b32.xlu1 %v6074_v41, %s5559_s3  ;;  %3756 = vrot.lane.b32.xlu0 %v6078_v53, %s5549_s20 }
0x117d   :  { %3758 = vrot.lane.b32.xlu1 %v6083_v43, %s5549_s20  ;;  %3780 = vrot.lane.b32.xlu0 %v6078_v53, %s5558_s30 }
0x1181   :  { %3782 = vrot.lane.b32.xlu1 %v6083_v43, %s5558_s30  ;;  %3804 = vrot.lane.b32.xlu0 %v6078_v53, %s5559_s3 }
0x1185   :  { %3806 = vrot.lane.b32.xlu1 %v6083_v43, %s5559_s3 }
0x11c7   :  { %v3745_v57 = vpop.permute.xlu0 %3744 }
0x11c8   :  { %v3816_v61 = vsel %vm347_vm8, %v3200_v34, %v3745_v57 }
0x11cb   :  { %v3747_v59 = vpop.permute.xlu1 %3746  ;;  %v3769_v60 = vpop.permute.xlu0 %3768 }
0x11cc   :  { %v3824_v62 = vsel %vm1745_vm9, %v3816_v61, %v3769_v60  ;;  %v3817_v2 = vsel %vm347_vm8, %v3276_v37, %v3747_v59  ;;  %v5495_v37 = vld [vmem:[#allocation2 + $0xb0] sm:$0xff]  ;;  %v5497_v61 = vld [vmem:[#allocation2 + $0xc0] sm:$0xff] }
0x11cf   :  { %v3771_v63 = vpop.permute.xlu1 %3770  ;;  %v3793_v0 = vpop.permute.xlu0 %3792 }
0x11d0   :  { %v3832_v1 = vsel %vm1754_vm10, %v3824_v62, %v3793_v0  ;;  %v3825_v3 = vsel %vm1745_vm9, %v3817_v2, %v3771_v63 }
0x11d1   :  { %v3840_v38 = vmul.f32 %v5490_v36, %v3832_v1 }
0x11d3   :  { %v3795_v4 = vpop.permute.xlu1 %3794  ;;  %5126 = vmatprep.mubr.msk.f32.mxu0 %vm222_vm4, %v3840_v38  ;;  %v3749_v5 = vpop.permute.xlu0 %3748 }
0x11d4   :  { %v3833_v6 = vsel %vm1754_vm10, %v3825_v3, %v3795_v4  ;;  %v3818_v45 = vsel %vm347_vm8, %v3352_v39, %v3749_v5 }
0x11d5   :  { %v3841_v8 = vmul.f32 %v5491_v7, %v3833_v6  ;;  %v5498_v7 = vld [vmem:[#allocation2 + $0xd0] sm:$0xff] }
0x11d7   :  { %v3751_v9 = vpop.permute.xlu1 %3750  ;;  %5127 = vmatmul.mubr.msk.f32.vlgmr.msra.gmra.mrb[54].mxu0 %vm222_vm4, %v3841_v8  ;;  %v3773_v10 = vpop.permute.xlu0 %3772  ;;  %v4563_v8 = vld [vmem:[#allocation2 + $0x360] ss:$0 sm:$0xff] }
0x11d8   :  { %v3826_v48 = vsel %vm1745_vm9, %v3818_v45, %v3773_v10  ;;  %v3819_v47 = vsel %vm347_vm8, %v3428_v42, %v3751_v9 }
0x11db   :  { %v3775_v11 = vpop.permute.xlu1 %3774  ;;  %v3797_v12 = vpop.permute.xlu0 %3796 }
0x11dc   :  { %v3834_v14 = vsel %vm1754_vm10, %v3826_v48, %v3797_v12  ;;  %v3827_v49 = vsel %vm1745_vm9, %v3819_v47, %v3775_v11 }
0x11dd   :  { %v3842_v16 = vmul.f32 %v5492_v15, %v3834_v14 }
0x11df   :  { %v3799_v17 = vpop.permute.xlu1 %3798  ;;  %5129 = vmatprep.mubr.msk.f32.mxu0 %vm222_vm4, %v3842_v16  ;;  %v3753_v19 = vpop.permute.xlu0 %3752 }
0x11e0   :  { %v3835_v20 = vsel %vm1754_vm10, %v3827_v49, %v3799_v17  ;;  %v3820_v25 = vsel %vm347_vm8, %v6070_v46, %v3753_v19 }
0x11e1   :  { %v3843_v21 = vmul.f32 %v5493_v18, %v3835_v20 }
0x11e3   :  { %v3755_v22 = vpop.permute.xlu1 %3754  ;;  %5130 = vmatmul.mubr.msk.f32.gmra.mrb[56].mxu0 %vm222_vm4, %v3843_v21  ;;  %v3777_v24 = vpop.permute.xlu0 %3776 }
0x11e4   :  { %v3828_v26 = vsel %vm1745_vm9, %v3820_v25, %v3777_v24  ;;  %v3821_v31 = vsel %vm347_vm8, %v6074_v41, %v3755_v22  ;;  %v2270_v24 = vld [vmem:[#allocation2 + $0x380] sm:$0xff] }
0x11e7   :  { %v3779_v23 = vpop.permute.xlu1 %3778  ;;  %v3801_v27 = vpop.permute.xlu0 %3800 }
0x11e8   :  { %v3836_v28 = vsel %vm1754_vm10, %v3828_v26, %v3801_v27  ;;  %v3829_v32 = vsel %vm1745_vm9, %v3821_v31, %v3779_v23  ;;  %v2271_v26 = vld [vmem:[#allocation2 + $0x388] sm:$0xff]  ;;  %v2272_v23 = vld [vmem:[#allocation2 + $0x390] sm:$0xff] }
0x11e9   :  { %v3844_v30 = vmul.f32 %v5494_v29, %v3836_v28  ;;  %v5357_v27 = vpack.c.bf16 %v2272_v23, %v2271_v26  ;;  %v2274_v28 = vld [vmem:[#allocation2 + $0x3a0] sm:$0xff]  ;;  %v2275_v29 = vld [vmem:[#allocation2 + $0x3a8] sm:$0xff] }
0x11ea   :  { %v5361_v31 = vpack.c.bf16 %v2275_v29, %v2274_v28 }
0x11eb   :  { %v3803_v33 = vpop.permute.xlu1 %3802  ;;  %5132 = vmatprep.mubr.msk.f32.mxu0 %vm222_vm4, %v3844_v30  ;;  %v3757_v34 = vpop.permute.xlu0 %3756  ;;  %v2276_v30 = vld [vmem:[#allocation2 + $0x3b0] sm:$0xff] }
0x11ec   :  { %v3837_v35 = vsel %vm1754_vm10, %v3829_v32, %v3803_v33  ;;  %v3822_v42 = vsel %vm347_vm8, %v6078_v53, %v3757_v34  ;;  %v2277_v32 = vld [vmem:[#allocation2 + $0x3b8] sm:$0xff]  ;;  %v2278_v34 = vld [vmem:[#allocation2 + $0x3c0] sm:$0xff] }
0x11ed   :  { %v3845_v51 = vmul.f32 %v5495_v37, %v3837_v35  ;;  %v5365_v33 = vpack.c.bf16 %v2277_v32, %v2276_v30  ;;  %v2279_v35 = vld [vmem:[#allocation2 + $0x3c8] sm:$0xff] }
0x11ee   :  { %v5369_v37 = vpack.c.bf16 %v2279_v35, %v2278_v34 }
0x11ef   :  { %v3759_v39 = vpop.permute.xlu1 %3758  ;;  %5133 = vmatmul.mubr.msk.f32.gmra.mrb[58].mxu0 %vm222_vm4, %v3845_v51  ;;  %v3781_v40 = vpop.permute.xlu0 %3780 }
0x11f0   :  { %v3830_v44 = vsel %vm1745_vm9, %v3822_v42, %v3781_v40  ;;  %v3823_v55 = vsel %vm347_vm8, %v6083_v43, %v3759_v39 }
0x11f3   :  { %v3783_v46 = vpop.permute.xlu1 %3782  ;;  %v3805_v50 = vpop.permute.xlu0 %3804 }
0x11f4   :  { %v3838_v41 = vsel %vm1754_vm10, %v3830_v44, %v3805_v50  ;;  %v3831_v57 = vsel %vm1745_vm9, %v3823_v55, %v3783_v46 }
0x11f5   :  { %v3846_v54 = vmul.f32 %v5496_v52, %v3838_v41  ;;  %v4566_v41 = vld [vmem:[#allocation2 + $0x368] ss:$0 sm:$0xff] }
0x11f7   :  { %v3807_v59 = vpop.permute.xlu1 %3806  ;;  %5135 = vmatprep.mubr.msk.f32.mxu0 %vm222_vm4, %v3846_v54  ;;  %v4567_v54 = vld [vmem:[#allocation2 + $0x370] ss:$0 sm:$0xff] }
0x11f8   :  { %v3839_v60 = vsel %vm1754_vm10, %v3831_v57, %v3807_v59 }
0x11f9   :  { %v3847_v53 = vmul.f32 %v5497_v61, %v3839_v60 }
0x11fb   :  { %5136 = vmatmul.mubr.msk.f32.gmra.mrb[60].mxu0 %vm222_vm4, %v3847_v53 }
0x12aa   :  { %v5128_v62 = vpop.f32.mrb[54].mxu0 }
0x12ab   :  { %v3938_v63 = vpop.f32.mrb[55].mxu0 }
0x12ac   :  { %v5337_v0 = vpack.c.bf16 %v5128_v62, %v3938_v63  ;;  %v2280_v62 = vld [vmem:[#allocation2 + $0x3d0] sm:$0xff]  ;;  %v2281_v63 = vld [vmem:[#allocation2 + $0x3d8] sm:$0xff] }
0x12ae   :  { %5338 = vmatprep.subr.bf16.mxu1 %v5337_v0 }
0x12af   :  { %5340 = vmatpush3.bf16.msra.mxu1 %v5337_v0  ;;  %v5373_v0 = vpack.c.bf16 %v2281_v63, %v2280_v62 }
0x12b6   :  { %v5131_v1 = vpop.f32.mrb[56].mxu0 }
0x12b7   :  { %v3948_v36 = vpop.f32.mrb[57].mxu0 }
0x12b8   :  { %v5341_v38 = vpack.c.bf16 %v5131_v1, %v3948_v36  ;;  %v4568_v1 = vld [vmem:[#allocation2 + $0x398] ss:$0 sm:$0xff] }
0x12ba   :  { %5342 = vmatprep.subr.bf16.mxu1 %v5341_v38 }
0x12bb   :  { %5344 = vmatpush3.bf16.msra.mxu1 %v5341_v38 }
0x12c2   :  { %v5134_v43 = vpop.f32.mrb[58].mxu0 }
0x12c3   :  { %v3958_v2 = vpop.f32.mrb[59].mxu0 }
0x12c4   :  { %v5345_v3 = vpack.c.bf16 %v5134_v43, %v3958_v2 }
0x12c6   :  { %5346 = vmatprep.subr.bf16.mxu1 %v5345_v3 }
0x12c7   :  { %5348 = vmatpush3.bf16.msra.mxu1 %v5345_v3 }
0x12ce   :  { %v5137_v4 = vpop.f32.mrb[60].mxu0 }
0x12cf   :  { %v3968_v5 = vpop.f32.mrb[61].mxu0 }
0x12d0   :  { %v5349_v6 = vpack.c.bf16 %v5137_v4, %v3968_v5  ;;  %v4571_v5 = vld [vmem:[#allocation2 + $0x3e0] ss:$0 sm:$0xff] }
0x12d2   :  { %5350 = vmatprep.subr.bf16.mxu1 %v5349_v6 }
0x12d3   :  { %5352 = vmatpush3.bf16.msra.mxu1 %v5349_v6 }
0x12d4   :  { %5362 = vmatprep.subr.bf16.mxu1 %v5361_v31 }
0x12d6   :  { %5155 = vmatmul.mubr.msk.f32.vlgmr.msra.gmra.mrb[42].mxu1 %vm225_vm6, %v5498_v7 }
0x12d7   :  { %5364 = vmatpush3.bf16.msra.mxu1 %v5361_v31  ;;  %v4575_v31 = vld [vmem:[#allocation2 + $0x3f0] ss:$0 sm:$0xff] }
0x12d8   :  { %5366 = vmatprep.subr.bf16.mxu1 %v5365_v33 }
0x12db   :  { %5368 = vmatpush3.bf16.msra.mxu1 %v5365_v33 }
0x12dc   :  { %5370 = vmatprep.subr.bf16.mxu1 %v5369_v37 }
0x12df   :  { %5372 = vmatpush3.bf16.msra.mxu1 %v5369_v37  ;;  %v4382_v37 = vld [vmem:[#allocation2 + $0xe0] sm:$0xff] }
0x12e0   :  { %5374 = vmatprep.subr.bf16.mxu1 %v5373_v0 }
0x12e3   :  { %5376 = vmatpush3.bf16.msra.mxu1 %v5373_v0 }
0x13a9   :  { %v5156_v9 = vpop.f32.mrb[42].mxu1 }
0x13aa   :  { %v4053_v10 = vadd.f32 %v5156_v9, %v4563_v8  ;;  %v4047_v45 = vpop.f32.mrb[43].mxu1 }
0x13ab   :  { %v4048_v48 = vadd.f32 %v4563_v8, %v4047_v45 }
0x13ac   :  { %v4057_v11 = vadd.f32 %v4053_v10, %v5884_v56 }
0x13ad   :  { %v4056_v12 = vadd.f32 %v4048_v48, %v5890_v58  ;;  %v2269_v58 = vld [vmem:[#allocation2 + $0x378] sm:$0xff] }
0x13ae   :  { %v4061_v14 = vsel %vm222_vm4, %v4057_v11, 0.0  ;;  %v5353_v25 = vpack.c.bf16 %v2270_v24, %v2269_v58 }
0x13af   :  { %4062 = vadd.xlane.f32.xlu1 %v4061_v14  ;;  %v4058_v15 = vsel %vm222_vm4, %v4056_v12, 0.0 }
0x13b0   :  { %4059 = vadd.xlane.f32.xlu0 %v4058_v15  ;;  %5354 = vmatprep.subr.bf16.mxu0 %v5353_v25 }
0x13b1   :  { %5356 = vmatpush3.bf16.msra.mxu0 %v5353_v25 }
0x13b2   :  { %5358 = vmatprep.subr.bf16.mxu0 %v5357_v27 }
0x13b5   :  { %5360 = vmatpush3.bf16.msra.mxu0 %v5357_v27  ;;  %v4574_v27 = vld [vmem:[#allocation2 + $0x3e8] ss:$0 sm:$0xff] }
0x143c   :  { %v4063_v16 = vpop.xlane.xlu1 %4062 }
0x143d   :  { %v4065_v47 = vmul.f32 0.03125, %v4063_v16  ;;  %v4060_v49 = vpop.xlane.xlu0 %4059 }
0x143e   :  { %v4064_v17 = vmul.f32 0.03125, %v4060_v49 }
0x143f   :  { %v4067_v19 = vsub.f32 %v4057_v11, %v4065_v47 }
0x1440   :  { %v4066_v20 = vsub.f32 %v4056_v12, %v4064_v17 }
0x1441   :  { %v4069_v22 = vmul.f32 %v4067_v19, %v4067_v19 }
0x1442   :  { %v4068_v18 = vmul.f32 %v4066_v20, %v4066_v20 }
0x1443   :  { %v4073_v56 = vsel %vm222_vm4, %v4069_v22, 0.0 }
0x1444   :  { %v4070_v21 = vsel %vm222_vm4, %v4068_v18, 0.0 }
0x1445   :  { %4071 = vadd.xlane.f32.xlu0 %v4070_v21  ;;  %v5560_v21 = vmov 0.0|0.0  }
0x1446   :  { %5377 = vmatprep.subr.bf16.mxu0 %v5560_v21 }
0x1449   :  { %4074 = vadd.xlane.f32.xlu0 %v4073_v56 }
0x14d2   :  { %v4072_v51 = vpop.xlane.xlu0 %4071 }
0x14d3   :  { %v4076_v39 = vmul.f32 0.03125, %v4072_v51  ;;  %v4383_v51 = vld [vmem:[#allocation2 + $0xe8] sm:$0xff] }
0x14d5   :  { %v4078_v40 = vadd.f32 1e-05, %v4076_v39 }
0x14d6   :  { %v4075_v42 = vpop.xlane.xlu0 %4074 }
0x14d7   :  { %5474 = vrsqrt.f32 %v4078_v40  ;;  %v4077_v44 = vmul.f32 0.03125, %v4075_v42  ;;  %v4308_v40 = vld [vmem:[#allocation2 + $0xd8] sm:$0x3]  ;;  %v5381_v42 = vpack.c.bf16 %v4383_v51, %v4382_v37 }
0x14d9   :  { %v4079_v46 = vadd.f32 1e-05, %v4077_v44  ;;  %v4384_v44 = vld [vmem:[#allocation2 + $0xf0] sm:$0xff] }
0x14db   :  { %5476 = vrsqrt.f32 %v4079_v46  ;;  %v4385_v46 = vld [vmem:[#allocation2 + $0xf8] sm:$0xff] }
0x14e1   :  { %v5475_v50 = vpop.eup %5474 }
0x14e2   :  { %v4082_v52 = vmul.f32 %v5475_v50, %v4066_v20  ;;  %v5384_v50 = vpack.c.bf16 %v4385_v46, %v4384_v44 }
0x14e4   :  { %v4088_v55 = vmul.f32 %v4566_v41, %v4082_v52 }
0x14e5   :  { %v5477_v57 = vpop.eup %5476 }
0x14e6   :  { %v4083_v59 = vmul.f32 %v5477_v57, %v4067_v19  ;;  %v4094_v60 = vadd.f32 %v4567_v54, %v4088_v55 }
0x14e8   :  { %v4089_v61 = vmul.f32 %v4566_v41, %v4083_v59  ;;  %5165 = vmatprep.mubr.msk.f32.mxu0 %vm222_vm4, %v4094_v60 }
0x14ea   :  { %v4095_v53 = vadd.f32 %v4567_v54, %v4089_v61  ;;  %v4577_v54 = vld [vmem:[#allocation2 + $0x100] ss:$0 sm:$0xff] }
0x14ec   :  { %5166 = vmatmul.mubr.msk.f32.vlgmr.msra.gmra.mrb[62].mxu0 %vm222_vm4, %v4095_v53 }
0x14ed   :  { %5191 = vmatprep.mubr.msk.f32.mxu0 %vm5555_vm7, %v5551_v13 }
0x15bf   :  { %v5167_v36 = vpop.f32.mrb[62].mxu0 }
0x15c0   :  { %v4178_v38 = vadd.f32 %v5167_v36, %v4568_v1  ;;  %v4172_v43 = vpop.f32.mrb[63].mxu0 }
0x15c1   :  { %v4173_v2 = vadd.f32 %v4568_v1, %v4172_v43 }
0x15c2   :  { %v4182_v4 = vmax.f32 %v4178_v38, 0.0 }
0x15c3   :  { %v4181_v3 = vmax.f32 %v4173_v2, 0.0 }
0x15c5   :  { %5184 = vmatprep.mubr.msk.f32.mxu1 %vm225_vm6, %v4181_v3 }
0x15c6   :  { %5185 = vmatmul.mubr.msk.f32.vlgmr.msra.gmra.mrb[44].mxu1 %vm225_vm6, %v4182_v4 }
0x1699   :  { %v5186_v6 = vpop.f32.mrb[44].mxu1 }
0x169a   :  { %v4265_v7 = vadd.f32 %v5186_v6, %v4571_v5  ;;  %v4259_v8 = vpop.f32.mrb[45].mxu1 }
0x169b   :  { %v4260_v9 = vadd.f32 %v4571_v5, %v4259_v8 }
0x169c   :  { %v4269_v10 = vadd.f32 %v4265_v7, %v4095_v53 }
0x169d   :  { %v4268_v45 = vadd.f32 %v4260_v9, %v4094_v60 }
0x169e   :  { %v4273_v48 = vsel %vm222_vm4, %v4269_v10, 0.0 }
0x169f   :  { %4274 = vadd.xlane.f32.xlu0 %v4273_v48  ;;  %v4270_v11 = vsel %vm222_vm4, %v4268_v45, 0.0 }
0x16a0   :  { %4271 = vadd.xlane.f32.xlu1 %v4270_v11 }
0x172c   :  { %v4275_v12 = vpop.xlane.xlu0 %4274 }
0x172d   :  { %v4277_v14 = vmul.f32 0.03125, %v4275_v12  ;;  %v4272_v15 = vpop.xlane.xlu1 %4271 }
0x172e   :  { %v4276_v16 = vmul.f32 0.03125, %v4272_v15 }
0x172f   :  { %v4279_v47 = vsub.f32 %v4269_v10, %v4277_v14 }
0x1730   :  { %v4278_v49 = vsub.f32 %v4268_v45, %v4276_v16 }
0x1731   :  { %v4281_v17 = vmul.f32 %v4279_v47, %v4279_v47 }
0x1732   :  { %v4280_v19 = vmul.f32 %v4278_v49, %v4278_v49 }
0x1733   :  { %v4285_v20 = vsel %vm222_vm4, %v4281_v17, 0.0 }
0x1734   :  { %4286 = vadd.xlane.f32.xlu0 %v4285_v20  ;;  %v4282_v18 = vsel %vm222_vm4, %v4280_v19, 0.0 }
0x1735   :  { %4283 = vadd.xlane.f32.xlu1 %v4282_v18 }
0x17c1   :  { %v4287_v22 = vpop.xlane.xlu0 %4286 }
0x17c2   :  { %v4289_v56 = vmul.f32 0.03125, %v4287_v22  ;;  %v4284_v58 = vpop.xlane.xlu1 %4283 }
0x17c3   :  { %v4288_v24 = vmul.f32 0.03125, %v4284_v58 }
0x17c4   :  { %v4291_v25 = vadd.f32 1e-05, %v4289_v56 }
0x17c5   :  { %v4290_v26 = vadd.f32 1e-05, %v4288_v24 }
0x17c6   :  { %5478 = vrsqrt.f32 %v4291_v25 }
0x17c7   :  { %5480 = vrsqrt.f32 %v4290_v26 }
0x17d0   :  { %v5479_v23 = vpop.eup %5478 }
0x17d1   :  { %v5481_v28 = vpop.eup %5480  ;;  %v4295_v29 = vmul.f32 %v5479_v23, %v4279_v47 }
0x17d2   :  { %v4294_v30 = vmul.f32 %v5481_v28, %v4278_v49 }
0x17d3   :  { %v4301_v32 = vmul.f32 %v4574_v27, %v4295_v29 }
0x17d4   :  { %v4300_v33 = vmul.f32 %v4574_v27, %v4294_v30 }
0x17d5   :  { %v4307_v34 = vadd.f32 %v4575_v31, %v4301_v32 }
0x17d6   :  { %v4306_v35 = vadd.f32 %v4575_v31, %v4300_v33 }
0x17d8   :  { %v5378_v39 = vpack.c.bf16 %v4307_v34, %v4306_v35 }
0x17da   :  { %5379 = vmatpush3.bf16.msra.mxu0 %v5378_v39 }
0x17db   :  { %5380 = vmatprep.subr.bf16.mxu0 %v5560_v21 }
0x17dd   :  { %5192 = vmatmul.mubr.msk.f32.vlgmr.msra.gmra.mrb[64].mxu0 %vm1745_vm9, %v4308_v40 }
0x17de   :  { %5382 = vmatpush3.bf16.msra.mxu0 %v5381_v42  ;;  %5202 = vmatprep.mubr.msk.f32.mxu0 %vm5555_vm7, %v5551_v13 }
0x17df   :  { %5383 = vmatprep.subr.bf16.mxu0 %v5560_v21 }
0x17e2   :  { %5385 = vmatpush3.bf16.msra.mxu0 %v5384_v50 }
0x18b0   :  { %v4378_v41 = vpop.f32.mrb[64].mxu0 }
0x18b1   :  { %v5193_v52 = vpop.f32.mrb[65].mxu0  ;;  %5203 = vmatmul.mubr.msk.f32.vlgmr.msra.gmra.mrb[66].mxu0 %vm222_vm4, %v4378_v41 }
0x1984   :  { %v4460_v55 = vpop.f32.mrb[66].mxu0 }
0x1985   :  { %v4461_v57 = vadd.f32 %v4577_v54, %v4460_v55  ;;  %v5204_v59 = vpop.f32.mrb[67].mxu0 }
0x1987   :  { %4465 = vst.msk [vmem:[#allocation5] sm:$0x3] %vm4464_vm11, %v4461_v57 }
0x1988   :  { %5532 = shalt.err (!%p5529_p12)
}
0x1989   :  { %s5533_s9 = scalar_lea.hbm %s6178_s2, 32 }
0x198a   :  { %p5534_p13 = scmp.ne.s32.totalorder %s6178_s2, %s5533_s9  ;;  %p5537_p0 = scmp.lt.u32.totalorder %s5533_s9, %s6178_s2 }
0x198c   :  { %p5539_p1 = pnand %p5537_p0, %p5534_p13 }
0x198e   :  { %5542 = shalt.err (!%p5539_p1)
}
0x198f   :  { %4475 = dma.vmem_to_hbm [thread:$0]  %s4473_s5, 32, %s6178_s2, [#allocation4]  }
0x1990   :  { %5545 = dma.done.wait [#allocation4], 32  }
0x1991   :  { %5546 = vsyncadd [#allocation4], 4294967264 }
0x1992   :  { %4479 = vsyncpa [#allocation3], 1 }
0x1993   :  { %4480 = vsyncpa [#allocation4], 1 }

</bundles_post_ra>
